<compile_context>
chip_gen: v6e
topology: v6e:2x2x1
jax: 0.10.0
libtpu: 0.0.40
codegen_flags: <defaults>
</compile_context>

<pallas_src>
import jax
import jax.numpy as jnp
from jax.experimental import pallas as pl
from jax.experimental.pallas import tpu as pltpu

LANE = 128          # lane-dense padding target for feature dims
TM = 128            # A_hat row tile
TK = 128            # A_hat column (reduction) tile
NEG_INF = -1e30     # bias for padded class columns (vanishes in log_softmax)


def _round_up(n, m):
    return ((n + m - 1) // m) * m


# ----------------------------- Pallas kernel ------------------------------ #
def _classifier_kernel(
    x_ref,                     # [N_pad, F_pad] f32   (full block)
    a_ref,                     # [TM, TK]       bf16  (streamed A_hat tile)
    p_ref,                     # [G, N_pad]     f32   (mean-pool matrix, full block)
    w_pre_ref, b_pre_ref,      # [F_pad, H_pad], [1, H_pad]
    w_conv_ref, b_conv_ref,    # [1, H_pad, H_pad], [1, 1, H_pad]  (layer-indexed)
    w_m1_ref, b_m1_ref,        # [H_pad, H_pad], [1, H_pad]
    w_m2_ref, b_m2_ref,        # [H_pad, C_pad], [1, C_pad]
    y_ref,                     # [G, C_pad] f32
    h_ref,                     # scratch [2, N_pad, H_pad] f32 (layer ping-pong)
    acc_ref,                   # scratch [TM, H_pad] f32 (row-tile aggregation acc)
):
    f32 = jnp.float32
    l = pl.program_id(0)           # conv layer
    i = pl.program_id(1)           # A row tile
    k = pl.program_id(2)           # A column (reduction) tile
    nl = pl.num_programs(0)
    ni = pl.num_programs(1)
    nk = pl.num_programs(2)

    # ---- pre_gnn (single Linear, plain_last): once, at the very first step ----
    @pl.when((l == 0) & (i == 0) & (k == 0))
    def _():
        h_ref[0] = (
            jnp.dot(x_ref[...], w_pre_ref[...], preferred_element_type=f32)
            + b_pre_ref[...]
        )

    # ---- reset the row-tile aggregation accumulator at start of reduction ----
    @pl.when(k == 0)
    def _():
        acc_ref[...] = jnp.zeros_like(acc_ref)

    # layer l reads h_ref[l % 2], writes h_ref[1 - l % 2]
    src = l % 2
    dst = 1 - src

    # ---- aggregation: acc += A_hat[i, k] @ h[k]   (bf16 MXU, f32 accumulate) ----
    col = pl.multiple_of(k * TK, TK)
    h_blk = h_ref[src, pl.ds(col, TK), :].astype(jnp.bfloat16)
    acc_ref[...] += jnp.dot(a_ref[...], h_blk, preferred_element_type=f32)

    # ---- end of reduction: conv weight matmul + bias + ReLU for this row tile ----
    @pl.when(k == nk - 1)
    def _():
        row = pl.multiple_of(i * TM, TM)
        h_new = (
            jnp.dot(acc_ref[...], w_conv_ref[0], preferred_element_type=f32)
            + b_conv_ref[0]
        )
        h_ref[dst, pl.ds(row, TM), :] = jnp.maximum(h_new, 0.0)

        # ---- last row tile of last conv layer: pool + post_gnn + log_softmax ----
        @pl.when((l == nl - 1) & (i == ni - 1))
        def _():
            h_fin = h_ref[dst]                                            # [N_pad, H_pad]
            g = jnp.dot(p_ref[...], h_fin, preferred_element_type=f32)    # [G, H_pad]
            g = jnp.maximum(
                jnp.dot(g, w_m1_ref[...], preferred_element_type=f32) + b_m1_ref[...],
                0.0,
            )
            logits = (
                jnp.dot(g, w_m2_ref[...], preferred_element_type=f32) + b_m2_ref[...]
            )
            # padded class columns carry bias = NEG_INF -> exp underflows to 0
            m = jnp.max(logits, axis=1, keepdims=True)
            lse = jnp.log(jnp.sum(jnp.exp(logits - m), axis=1, keepdims=True)) + m
            y_ref[...] = logits - lse


# ------------------------------- wrapper ----------------------------------- #
def graph_classifier_forward(x, a_hat, pool_mat, params, n_classes):
    """Fused forward. Returns (log_probs [G, C], aux_loss)."""
    (w_pre, b_pre, conv_ws, conv_bs, w_m1, b_m1, w_m2, b_m2) = params
    n_nodes, n_feat = x.shape
    n_graphs = pool_mat.shape[0]
    hidden = w_pre.shape[1]
    n_layers = len(conv_ws)

    n_pad = _round_up(max(n_nodes, TM), TM)         # TM == TK
    f_pad = _round_up(n_feat, LANE)
    h_pad = _round_up(hidden, LANE)
    c_pad = _round_up(n_classes, LANE)

    # Zero padding is exact: padded node rows/cols and padded feature columns
    # never influence real outputs (A_hat / pool_mat padded entries are 0).
    x_p = jnp.pad(x, ((0, n_pad - n_nodes), (0, f_pad - n_feat)))
    a_p = jnp.pad(a_hat, ((0, n_pad - n_nodes), (0, n_pad - n_nodes)))
    a_p = a_p.astype(jnp.bfloat16)                  # dominant HBM/VMEM consumer
    p_p = jnp.pad(pool_mat, ((0, 0), (0, n_pad - n_nodes)))

    w_pre_p = jnp.pad(w_pre, ((0, f_pad - n_feat), (0, h_pad - hidden)))
    b_pre_p = jnp.pad(b_pre, ((0, 0), (0, h_pad - hidden)))
    w_cv_p = jnp.stack(
        [jnp.pad(w, ((0, h_pad - hidden), (0, h_pad - hidden))) for w in conv_ws]
    )                                               # [L, H_pad, H_pad]
    b_cv_p = jnp.stack(
        [jnp.pad(b, ((0, 0), (0, h_pad - hidden))) for b in conv_bs]
    )                                               # [L, 1, H_pad]
    w_m1_p = jnp.pad(w_m1, ((0, h_pad - hidden), (0, h_pad - hidden)))
    b_m1_p = jnp.pad(b_m1, ((0, 0), (0, h_pad - hidden)))
    w_m2_p = jnp.pad(w_m2, ((0, h_pad - hidden), (0, c_pad - n_classes)))
    b_m2_p = jnp.pad(
        b_m2, ((0, 0), (0, c_pad - n_classes)), constant_values=NEG_INF
    )

    nt = n_pad // TM
    kt = n_pad // TK
    grid = (n_layers, nt, kt)

    def _const(shape):
        nd = len(shape)
        return pl.BlockSpec(shape, lambda l, i, k, _nd=nd: (0,) * _nd)

    in_specs = [
        _const(x_p.shape),                                           # x
        pl.BlockSpec((TM, TK), lambda l, i, k: (i, k)),              # A_hat tile
        _const(p_p.shape),                                           # pool matrix
        _const(w_pre_p.shape), _const(b_pre_p.shape),                # pre_gnn
        pl.BlockSpec((1, h_pad, h_pad), lambda l, i, k: (l, 0, 0)),  # conv W (per layer)
        pl.BlockSpec((1, 1, h_pad), lambda l, i, k: (l, 0, 0)),      # conv b (per layer)
        _const(w_m1_p.shape), _const(b_m1_p.shape),                  # post_gnn
        _const(w_m2_p.shape), _const(b_m2_p.shape),
    ]
    out_spec = pl.BlockSpec((n_graphs, c_pad), lambda l, i, k: (0, 0))

    flops = (
        2 * n_pad * f_pad * h_pad                        # pre_gnn
        + n_layers * (2 * n_pad * n_pad * h_pad          # A_hat @ h
                      + 2 * n_pad * h_pad * h_pad)       # conv weight matmul
        + 2 * n_graphs * n_pad * h_pad                   # mean pool
        + 2 * n_graphs * h_pad * h_pad                   # post_gnn hidden
        + 2 * n_graphs * h_pad * c_pad                   # post_gnn out
    )
    bytes_accessed = (
        n_layers * a_p.size * 2                          # A_hat re-streamed per layer
        + (x_p.size + p_p.size) * 4
        + (w_pre_p.size + b_pre_p.size + w_cv_p.size + b_cv_p.size
           + w_m1_p.size + b_m1_p.size + w_m2_p.size + b_m2_p.size) * 4
        + n_graphs * c_pad * 4
    )
    cost = pl.CostEstimate(
        flops=int(flops),
        transcendentals=int(n_graphs * c_pad),
        bytes_accessed=int(bytes_accessed),
    )

    y_pad = pl.pallas_call(
        _classifier_kernel,
        out_shape=jax.ShapeDtypeStruct((n_graphs, c_pad), jnp.float32),
        grid_spec=pltpu.PrefetchScalarGridSpec(
            num_scalar_prefetch=0,
            grid=grid,
            in_specs=in_specs,
            out_specs=out_spec,
            scratch_shapes=[
                pltpu.VMEM((2, n_pad, h_pad), jnp.float32),   # h ping-pong buffers
                pltpu.VMEM((TM, h_pad), jnp.float32),         # row-tile aggregation acc
            ],
        ),
        compiler_params=pltpu.CompilerParams(
            # layer / row / reduction axes all carry scratch state -> 'arbitrary'
            dimension_semantics=("arbitrary", "arbitrary", "arbitrary"),
            vmem_limit_bytes=32 * 1024 * 1024,
        ),
        cost_estimate=cost,
    )(x_p, a_p, p_p, w_pre_p, b_pre_p, w_cv_p, b_cv_p,
      w_m1_p, b_m1_p, w_m2_p, b_m2_p)

    aux_loss = jnp.float32(0.0)     # pool_method=None -> aux_loss stays 0.0
    return y_pad[:, :n_classes], aux_loss


# ------------------------------ parameter init ----------------------------- #
def _glorot(key, shape):
    fan_in, fan_out = shape
    limit = jnp.sqrt(6.0 / (fan_in + fan_out))
    return jax.random.uniform(key, shape, jnp.float32, -limit, limit)


def init_params(key, n_node_features, hidden, n_classes,
                n_pre_convs=2, n_post_convs=2):
    key, k = jax.random.split(key)
    w_pre = _glorot(k, (n_node_features, hidden))
    b_pre = jnp.zeros((1, hidden), jnp.float32)
    conv_ws, conv_bs = [], []
    for _ in range(n_pre_convs + n_post_convs):
        key, k = jax.random.split(key)
        conv_ws.append(_glorot(k, (hidden, hidden)))
        conv_bs.append(jnp.zeros((1, hidden), jnp.float32))
    key, k1, k2 = jax.random.split(key, 3)
    w_m1 = _glorot(k1, (hidden, hidden))
    b_m1 = jnp.zeros((1, hidden), jnp.float32)
    w_m2 = _glorot(k2, (hidden, n_classes))
    b_m2 = jnp.zeros((1, n_classes), jnp.float32)
    return (w_pre, b_pre, tuple(conv_ws), tuple(conv_bs), w_m1, b_m1, w_m2, b_m2)


# ------------------------------ graph building ----------------------------- #
def build_dense_graph(edge_index, batch, n_nodes, n_graphs):
    """Dense GCN-normalized adjacency and mean-pool matrix."""
    src, dst = edge_index
    adj = jnp.zeros((n_nodes, n_nodes), jnp.float32)
    adj = adj.at[src, dst].set(1.0)
    adj = adj.at[dst, src].set(1.0)                         # symmetrize
    a_tilde = adj + jnp.eye(n_nodes, dtype=jnp.float32)     # self loops
    deg = jnp.sum(a_tilde, axis=1)
    d_inv_sqrt = 1.0 / jnp.sqrt(deg)
    a_hat = d_inv_sqrt[:, None] * a_tilde * d_inv_sqrt[None, :]

    one_hot = (batch[None, :] == jnp.arange(n_graphs)[:, None]).astype(jnp.float32)
    counts = jnp.maximum(jnp.sum(one_hot, axis=1, keepdims=True), 1.0)  # guard empty
    pool_mat = one_hot / counts                                         # mean pool
    return a_hat, pool_mat


# ----------------------------- pure-JAX reference --------------------------- #
def reference_forward(x, a_hat, pool_mat, params):
    (w_pre, b_pre, conv_ws, conv_bs, w_m1, b_m1, w_m2, b_m2) = params
    a = a_hat.astype(jnp.bfloat16).astype(jnp.float32)      # kernel uses bf16 A
    h = x @ w_pre + b_pre
    for w, b in zip(conv_ws, conv_bs):
        h = jnp.maximum(a @ h @ w + b, 0.0)
    g = pool_mat @ h
    g = jnp.maximum(g @ w_m1 + b_m1, 0.0)
    logits = g @ w_m2 + b_m2
    return jax.nn.log_softmax(logits, axis=1)


# ---------------------------------- main ----------------------------------- #
if __name__ == "__main__":
    # config (synthetic): hidden_features=32, relu nonlinearity, GCN conv,
    # pre_pool_convs=2, post_pool_convs=2, pool_method=None
    N_NODE_FEATURES = 4
    N_CLASSES = 3
    HIDDEN = 32
    NODES_PER_GRAPH = 10
    N_GRAPHS = 16
    N = NODES_PER_GRAPH * N_GRAPHS          # 160 nodes -> padded to 256 (2x2 A tiles)

    key = jax.random.PRNGKey(0)
    key, kx = jax.random.split(key)
    x = jax.random.normal(kx, (N, N_NODE_FEATURES), jnp.float32)

    # ring graphs
    src_list, dst_list = [], []
    for g in range(N_GRAPHS):
        base = g * NODES_PER_GRAPH
        for i in range(NODES_PER_GRAPH):
            src_list.append(base + i)
            dst_list.append(base + (i + 1) % NODES_PER_GRAPH)
    edge_index = (jnp.array(src_list, jnp.int32), jnp.array(dst_list, jnp.int32))
    batch = jnp.repeat(jnp.arange(N_GRAPHS, dtype=jnp.int32), NODES_PER_GRAPH)

    a_hat, pool_mat = build_dense_graph(edge_index, batch, N, N_GRAPHS)
    params = init_params(key, N_NODE_FEATURES, HIDDEN, N_CLASSES)

    y, aux_loss = graph_classifier_forward(x, a_hat, pool_mat, params, N_CLASSES)
    y = jax.block_until_ready(y)

    assert y.shape == (N_GRAPHS, N_CLASSES)
    # log_softmax rows must sum to 1 in probability space
    assert bool(jnp.allclose(jnp.sum(jnp.exp(y), axis=1), 1.0, atol=1e-4))
    # match the pure-JAX reference (loose tolerance: bf16 aggregation path)
    y_ref = reference_forward(x, a_hat, pool_mat, params)
    assert bool(jnp.allclose(y, y_ref, atol=1e-1, rtol=1e-1))
    assert float(aux_loss) == 0.0

    print("KERNEL_OK")
</pallas_src>

<mosaic_0001>
module attributes {stable_mosaic.version = 11 : i64} {
  func.func @_classifier_kernel(%arg0: i32, %arg1: i32, %arg2: i32, %arg3: memref<256x128xf32, #tpu.memory_space<vmem>>, %arg4: memref<128x128xbf16, #tpu.memory_space<vmem>>, %arg5: memref<16x256xf32, #tpu.memory_space<vmem>>, %arg6: memref<128x128xf32, #tpu.memory_space<vmem>>, %arg7: memref<1x128xf32, #tpu.memory_space<vmem>>, %arg8: memref<1x128x128xf32, #tpu.memory_space<vmem>>, %arg9: memref<1x1x128xf32, #tpu.memory_space<vmem>>, %arg10: memref<128x128xf32, #tpu.memory_space<vmem>>, %arg11: memref<1x128xf32, #tpu.memory_space<vmem>>, %arg12: memref<128x128xf32, #tpu.memory_space<vmem>>, %arg13: memref<1x128xf32, #tpu.memory_space<vmem>>, %arg14: memref<16x128xf32, #tpu.memory_space<vmem>>, %arg15: memref<2x256x128xf32, #tpu.memory_space<vmem>>, %arg16: memref<128x128xf32, #tpu.memory_space<vmem>>) attributes {dimension_semantics = [#tpu.dimension_semantics<arbitrary>, #tpu.dimension_semantics<arbitrary>, #tpu.dimension_semantics<arbitrary>], iteration_bounds = array<i64: 4, 2, 2>, scalar_prefetch = 0 : i64, scratch_operands = 2 : i64, tpu.core_type = #tpu.core_type<tc>, window_params = [{pipeline_mode = #tpu.pipeline_mode<synchronous>, transform_indices = @transform_0, window_bounds = array<i64: 256, 128>}, {transform_indices = @transform_1, window_bounds = array<i64: 128, 128>}, {pipeline_mode = #tpu.pipeline_mode<synchronous>, transform_indices = @transform_2, window_bounds = array<i64: 16, 256>}, {pipeline_mode = #tpu.pipeline_mode<synchronous>, transform_indices = @transform_3, window_bounds = array<i64: 128, 128>}, {pipeline_mode = #tpu.pipeline_mode<synchronous>, transform_indices = @transform_4, window_bounds = array<i64: 1, 128>}, {transform_indices = @transform_5, window_bounds = array<i64: 1, 128, 128>}, {transform_indices = @transform_6, window_bounds = array<i64: 1, 1, 128>}, {pipeline_mode = #tpu.pipeline_mode<synchronous>, transform_indices = @transform_7, window_bounds = array<i64: 128, 128>}, {pipeline_mode = #tpu.pipeline_mode<synchronous>, transform_indices = @transform_8, window_bounds = array<i64: 1, 128>}, {pipeline_mode = #tpu.pipeline_mode<synchronous>, transform_indices = @transform_9, window_bounds = array<i64: 128, 128>}, {pipeline_mode = #tpu.pipeline_mode<synchronous>, transform_indices = @transform_10, window_bounds = array<i64: 1, 128>}, {pipeline_mode = #tpu.pipeline_mode<synchronous>, transform_indices = @transform_11, window_bounds = array<i64: 16, 128>}]} {
    %c0_i32 = arith.constant 0 : i32
    %0 = arith.cmpi eq, %arg0, %c0_i32 : i32
    %c0_i32_0 = arith.constant 0 : i32
    %1 = arith.cmpi eq, %arg1, %c0_i32_0 : i32
    %2 = arith.andi %0, %1 : i1
    %c0_i32_1 = arith.constant 0 : i32
    %3 = arith.cmpi eq, %arg2, %c0_i32_1 : i32
    %4 = arith.andi %2, %3 : i1
    %5 = arith.extui %4 : i1 to i32
    %c0_i32_2 = arith.constant 0 : i32
    %6 = arith.cmpi ne, %5, %c0_i32_2 : i32
    scf.if %6 {
      %c0_18 = arith.constant 0 : index
      %c0_19 = arith.constant 0 : index
      %36 = vector.load %arg3[%c0_18, %c0_19] : memref<256x128xf32, #tpu.memory_space<vmem>>, vector<256x128xf32>
      %c0_20 = arith.constant 0 : index
      %c0_21 = arith.constant 0 : index
      %37 = vector.load %arg6[%c0_20, %c0_21] : memref<128x128xf32, #tpu.memory_space<vmem>>, vector<128x128xf32>
      %cst_22 = arith.constant dense<0.000000e+00> : vector<256x128xf32>
      %38 = tpu.matmul %36, %37, %cst_22 {dimension_numbers = #tpu.dot_dimension_numbers<[1], [0], [0], [1], [0, 0, 1, 1], [], []>} : vector<256x128xf32>, vector<128x128xf32>, vector<256x128xf32> -> vector<256x128xf32>
      %c0_23 = arith.constant 0 : index
      %c0_24 = arith.constant 0 : index
      %39 = vector.load %arg7[%c0_23, %c0_24] : memref<1x128xf32, #tpu.memory_space<vmem>>, vector<1x128xf32>
      %40 = vector.broadcast %39 : vector<1x128xf32> to vector<256x128xf32>
      %41 = arith.addf %38, %40 : vector<256x128xf32>
      %c0_25 = arith.constant 0 : index
      %c0_26 = arith.constant 0 : index
      %c0_27 = arith.constant 0 : index
      %42 = vector.load %arg15[%c0_25, %c0_26, %c0_27] : memref<2x256x128xf32, #tpu.memory_space<vmem>>, vector<1x256x128xf32>
      %43 = vector.shape_cast %42 : vector<1x256x128xf32> to vector<256x128xf32>
      %44 = vector.shape_cast %41 : vector<256x128xf32> to vector<1x256x128xf32>
      tpu.vector_store %arg15[%c0_25, %c0_26, %c0_27], %44 {strides = array<i32>} : memref<2x256x128xf32, #tpu.memory_space<vmem>>, vector<1x256x128xf32>,
    } else {
    }
    %c0_i32_3 = arith.constant 0 : i32
    %7 = arith.cmpi eq, %arg2, %c0_i32_3 : i32
    %8 = arith.extui %7 : i1 to i32
    %c0_i32_4 = arith.constant 0 : i32
    %9 = arith.cmpi ne, %8, %c0_i32_4 : i32
    scf.if %9 {
      %cst_18 = arith.constant 0.000000e+00 : f32
      %36 = vector.broadcast %cst_18 : f32 to vector<128x128xf32>
      %c0_19 = arith.constant 0 : index
      %c0_20 = arith.constant 0 : index
      %37 = vector.load %arg16[%c0_19, %c0_20] : memref<128x128xf32, #tpu.memory_space<vmem>>, vector<128x128xf32>
      tpu.vector_store %arg16[%c0_19, %c0_20], %36 {strides = array<i32>} : memref<128x128xf32, #tpu.memory_space<vmem>>, vector<128x128xf32>,
    } else {
    }
    %c2_i32 = arith.constant 2 : i32
    %c0_i32_5 = arith.constant 0 : i32
    %10 = arith.cmpi eq, %c2_i32, %c0_i32_5 : i32
    %c1_i32 = arith.constant 1 : i32
    %11 = arith.select %10, %c1_i32, %c2_i32 : i32
    %12 = arith.remsi %arg0, %11 : i32
    %c0_i32_6 = arith.constant 0 : i32
    %13 = arith.cmpi ne, %12, %c0_i32_6 : i32
    %c0_i32_7 = arith.constant 0 : i32
    %14 = arith.cmpi slt, %12, %c0_i32_7 : i32
    %c0_i32_8 = arith.constant 0 : i32
    %15 = arith.cmpi slt, %11, %c0_i32_8 : i32
    %16 = arith.xori %14, %15 : i1
    %17 = arith.andi %16, %13 : i1
    %18 = arith.addi %12, %11 : i32
    %19 = arith.select %17, %18, %12 : i32
    %c1_i32_9 = arith.constant 1 : i32
    %20 = arith.subi %c1_i32_9, %19 : i32
    %c128_i32 = arith.constant 128 : i32
    %21 = arith.muli %arg2, %c128_i32 : i32
    %22 = tpu.assume_multiple %21, 128 : i32
    %23 = arith.index_cast %19 : i32 to index
    %24 = arith.index_cast %22 : i32 to index
    %c0 = arith.constant 0 : index
    %25 = vector.load %arg15[%23, %24, %c0] : memref<2x256x128xf32, #tpu.memory_space<vmem>>, vector<1x128x128xf32>
    %26 = vector.shape_cast %25 : vector<1x128x128xf32> to vector<128x128xf32>
    %27 = arith.truncf %26 : vector<128x128xf32> to vector<128x128xbf16>
    %c0_10 = arith.constant 0 : index
    %c0_11 = arith.constant 0 : index
    %28 = vector.load %arg16[%c0_10, %c0_11] : memref<128x128xf32, #tpu.memory_space<vmem>>, vector<128x128xf32>
    %c0_12 = arith.constant 0 : index
    %c0_13 = arith.constant 0 : index
    %29 = vector.load %arg4[%c0_12, %c0_13] : memref<128x128xbf16, #tpu.memory_space<vmem>>, vector<128x128xbf16>
    %cst = arith.constant dense<0.000000e+00> : vector<128x128xf32>
    %30 = tpu.matmul %29, %27, %cst {dimension_numbers = #tpu.dot_dimension_numbers<[1], [0], [0], [1], [0, 0, 1, 1], [], []>} : vector<128x128xbf16>, vector<128x128xbf16>, vector<128x128xf32> -> vector<128x128xf32>
    %31 = arith.addf %28, %30 : vector<128x128xf32>
    %c0_14 = arith.constant 0 : index
    %c0_15 = arith.constant 0 : index
    %32 = vector.load %arg16[%c0_14, %c0_15] : memref<128x128xf32, #tpu.memory_space<vmem>>, vector<128x128xf32>
    tpu.vector_store %arg16[%c0_14, %c0_15], %31 {strides = array<i32>} : memref<128x128xf32, #tpu.memory_space<vmem>>, vector<128x128xf32>,
    %c1_i32_16 = arith.constant 1 : i32
    %33 = arith.cmpi eq, %arg2, %c1_i32_16 : i32
    %34 = arith.extui %33 : i1 to i32
    %c0_i32_17 = arith.constant 0 : i32
    %35 = arith.cmpi ne, %34, %c0_i32_17 : i32
    scf.if %35 {
      %c128_i32_18 = arith.constant 128 : i32
      %36 = arith.muli %arg1, %c128_i32_18 : i32
      %37 = tpu.assume_multiple %36, 128 : i32
      %c0_19 = arith.constant 0 : index
      %c0_20 = arith.constant 0 : index
      %38 = vector.load %arg16[%c0_19, %c0_20] : memref<128x128xf32, #tpu.memory_space<vmem>>, vector<128x128xf32>
      %c0_21 = arith.constant 0 : index
      %c0_22 = arith.constant 0 : index
      %c0_23 = arith.constant 0 : index
      %39 = vector.load %arg8[%c0_21, %c0_22, %c0_23] : memref<1x128x128xf32, #tpu.memory_space<vmem>>, vector<1x128x128xf32>
      %40 = vector.shape_cast %39 : vector<1x128x128xf32> to vector<128x128xf32>
      %cst_24 = arith.constant dense<0.000000e+00> : vector<128x128xf32>
      %41 = tpu.matmul %38, %40, %cst_24 {dimension_numbers = #tpu.dot_dimension_numbers<[1], [0], [0], [1], [0, 0, 1, 1], [], []>} : vector<128x128xf32>, vector<128x128xf32>, vector<128x128xf32> -> vector<128x128xf32>
      %c0_25 = arith.constant 0 : index
      %c0_26 = arith.constant 0 : index
      %c0_27 = arith.constant 0 : index
      %42 = vector.load %arg9[%c0_25, %c0_26, %c0_27] : memref<1x1x128xf32, #tpu.memory_space<vmem>>, vector<1x1x128xf32>
      %43 = vector.shape_cast %42 : vector<1x1x128xf32> to vector<1x128xf32>
      %44 = vector.broadcast %43 : vector<1x128xf32> to vector<128x128xf32>
      %45 = arith.addf %41, %44 : vector<128x128xf32>
      %cst_28 = arith.constant 0.000000e+00 : f32
      %46 = vector.broadcast %cst_28 : f32 to vector<128x128xf32>
      %47 = arith.maximumf %45, %46 : vector<128x128xf32>
      %48 = arith.index_cast %20 : i32 to index
      %49 = arith.index_cast %37 : i32 to index
      %c0_29 = arith.constant 0 : index
      %50 = vector.load %arg15[%48, %49, %c0_29] : memref<2x256x128xf32, #tpu.memory_space<vmem>>, vector<1x128x128xf32>
      %51 = vector.shape_cast %50 : vector<1x128x128xf32> to vector<128x128xf32>
      %52 = vector.shape_cast %47 : vector<128x128xf32> to vector<1x128x128xf32>
      tpu.vector_store %arg15[%48, %49, %c0_29], %52 {strides = array<i32>} : memref<2x256x128xf32, #tpu.memory_space<vmem>>, vector<1x128x128xf32>,
      %c3_i32 = arith.constant 3 : i32
      %53 = arith.cmpi eq, %arg0, %c3_i32 : i32
      %c1_i32_30 = arith.constant 1 : i32
      %54 = arith.cmpi eq, %arg1, %c1_i32_30 : i32
      %55 = arith.andi %53, %54 : i1
      %56 = arith.extui %55 : i1 to i32
      %c0_i32_31 = arith.constant 0 : i32
      %57 = arith.cmpi ne, %56, %c0_i32_31 : i32
      scf.if %57 {
        %58 = arith.index_cast %20 : i32 to index
        %c0_32 = arith.constant 0 : index
        %c0_33 = arith.constant 0 : index
        %59 = vector.load %arg15[%58, %c0_32, %c0_33] : memref<2x256x128xf32, #tpu.memory_space<vmem>>, vector<1x256x128xf32>
        %60 = vector.shape_cast %59 : vector<1x256x128xf32> to vector<256x128xf32>
        %c0_34 = arith.constant 0 : index
        %c0_35 = arith.constant 0 : index
        %61 = vector.load %arg5[%c0_34, %c0_35] : memref<16x256xf32, #tpu.memory_space<vmem>>, vector<16x256xf32>
        %cst_36 = arith.constant dense<0.000000e+00> : vector<16x128xf32>
        %62 = tpu.matmul %61, %60, %cst_36 {dimension_numbers = #tpu.dot_dimension_numbers<[1], [0], [0], [1], [0, 0, 1, 1], [], []>} : vector<16x256xf32>, vector<256x128xf32>, vector<16x128xf32> -> vector<16x128xf32>
        %c0_37 = arith.constant 0 : index
        %c0_38 = arith.constant 0 : index
        %63 = vector.load %arg10[%c0_37, %c0_38] : memref<128x128xf32, #tpu.memory_space<vmem>>, vector<128x128xf32>
        %cst_39 = arith.constant dense<0.000000e+00> : vector<16x128xf32>
        %64 = tpu.matmul %62, %63, %cst_39 {dimension_numbers = #tpu.dot_dimension_numbers<[1], [0], [0], [1], [0, 0, 1, 1], [], []>} : vector<16x128xf32>, vector<128x128xf32>, vector<16x128xf32> -> vector<16x128xf32>
        %c0_40 = arith.constant 0 : index
        %c0_41 = arith.constant 0 : index
        %65 = vector.load %arg11[%c0_40, %c0_41] : memref<1x128xf32, #tpu.memory_space<vmem>>, vector<1x128xf32>
        %66 = vector.broadcast %65 : vector<1x128xf32> to vector<16x128xf32>
        %67 = arith.addf %64, %66 : vector<16x128xf32>
        %cst_42 = arith.constant 0.000000e+00 : f32
        %68 = vector.broadcast %cst_42 : f32 to vector<16x128xf32>
        %69 = arith.maximumf %67, %68 : vector<16x128xf32>
        %c0_43 = arith.constant 0 : index
        %c0_44 = arith.constant 0 : index
        %70 = vector.load %arg12[%c0_43, %c0_44] : memref<128x128xf32, #tpu.memory_space<vmem>>, vector<128x128xf32>
        %cst_45 = arith.constant dense<0.000000e+00> : vector<16x128xf32>
        %71 = tpu.matmul %69, %70, %cst_45 {dimension_numbers = #tpu.dot_dimension_numbers<[1], [0], [0], [1], [0, 0, 1, 1], [], []>} : vector<16x128xf32>, vector<128x128xf32>, vector<16x128xf32> -> vector<16x128xf32>
        %c0_46 = arith.constant 0 : index
        %c0_47 = arith.constant 0 : index
        %72 = vector.load %arg13[%c0_46, %c0_47] : memref<1x128xf32, #tpu.memory_space<vmem>>, vector<1x128xf32>
        %73 = vector.broadcast %72 : vector<1x128xf32> to vector<16x128xf32>
        %74 = arith.addf %71, %73 : vector<16x128xf32>
        %cst_48 = arith.constant dense<0xFF800000> : vector<16xf32>
        %75 = vector.multi_reduction <maximumf>, %74, %cst_48 [1] : vector<16x128xf32> to vector<16xf32>
        %76 = vector.shape_cast %75 : vector<16xf32> to vector<16x1xf32>
        %77 = vector.broadcast %76 : vector<16x1xf32> to vector<16x128xf32>
        %78 = arith.subf %74, %77 : vector<16x128xf32>
        %79 = math.exp %78 : vector<16x128xf32>
        %cst_49 = arith.constant dense<0.000000e+00> : vector<16xf32>
        %80 = vector.multi_reduction <add>, %79, %cst_49 [1] : vector<16x128xf32> to vector<16xf32>
        %81 = vector.shape_cast %80 : vector<16xf32> to vector<16x1xf32>
        %82 = math.log %81 : vector<16x1xf32>
        %83 = arith.addf %82, %76 : vector<16x1xf32>
        %84 = vector.broadcast %83 : vector<16x1xf32> to vector<16x128xf32>
        %85 = arith.subf %74, %84 : vector<16x128xf32>
        %c0_50 = arith.constant 0 : index
        %c0_51 = arith.constant 0 : index
        %86 = vector.load %arg14[%c0_50, %c0_51] : memref<16x128xf32, #tpu.memory_space<vmem>>, vector<16x128xf32>
        tpu.vector_store %arg14[%c0_50, %c0_51], %85 {strides = array<i32>} : memref<16x128xf32, #tpu.memory_space<vmem>>, vector<16x128xf32>,
      } else {
      }
    } else {
    }
    return
  }
  func.func @transform_0(%arg0: i32, %arg1: i32, %arg2: i32) -> (i32, i32) {
    %c0_i32 = arith.constant 0 : i32
    %c0_i32_0 = arith.constant 0 : i32
    %c0_i32_1 = arith.constant 0 : i32
    return %c0_i32, %c0_i32_0 : i32, i32
  }
  func.func @transform_1(%arg0: i32, %arg1: i32, %arg2: i32) -> (i32, i32) {
    %c0_i32 = arith.constant 0 : i32
    return %arg1, %arg2 : i32, i32
  }
  func.func @transform_2(%arg0: i32, %arg1: i32, %arg2: i32) -> (i32, i32) {
    %c0_i32 = arith.constant 0 : i32
    %c0_i32_0 = arith.constant 0 : i32
    %c0_i32_1 = arith.constant 0 : i32
    return %c0_i32, %c0_i32_0 : i32, i32
  }
  func.func @transform_3(%arg0: i32, %arg1: i32, %arg2: i32) -> (i32, i32) {
    %c0_i32 = arith.constant 0 : i32
    %c0_i32_0 = arith.constant 0 : i32
    %c0_i32_1 = arith.constant 0 : i32
    return %c0_i32, %c0_i32_0 : i32, i32
  }
  func.func @transform_4(%arg0: i32, %arg1: i32, %arg2: i32) -> (i32, i32) {
    %c0_i32 = arith.constant 0 : i32
    %c0_i32_0 = arith.constant 0 : i32
    %c0_i32_1 = arith.constant 0 : i32
    return %c0_i32, %c0_i32_0 : i32, i32
  }
  func.func @transform_5(%arg0: i32, %arg1: i32, %arg2: i32) -> (i32, i32, i32) {
    %c0_i32 = arith.constant 0 : i32
    %c0_i32_0 = arith.constant 0 : i32
    %c0_i32_1 = arith.constant 0 : i32
    return %arg0, %c0_i32, %c0_i32_0 : i32, i32, i32
  }
  func.func @transform_6(%arg0: i32, %arg1: i32, %arg2: i32) -> (i32, i32, i32) {
    %c0_i32 = arith.constant 0 : i32
    %c0_i32_0 = arith.constant 0 : i32
    %c0_i32_1 = arith.constant 0 : i32
    return %arg0, %c0_i32, %c0_i32_0 : i32, i32, i32
  }
  func.func @transform_7(%arg0: i32, %arg1: i32, %arg2: i32) -> (i32, i32) {
    %c0_i32 = arith.constant 0 : i32
    %c0_i32_0 = arith.constant 0 : i32
    %c0_i32_1 = arith.constant 0 : i32
    return %c0_i32, %c0_i32_0 : i32, i32
  }
  func.func @transform_8(%arg0: i32, %arg1: i32, %arg2: i32) -> (i32, i32) {
    %c0_i32 = arith.constant 0 : i32
    %c0_i32_0 = arith.constant 0 : i32
    %c0_i32_1 = arith.constant 0 : i32
    return %c0_i32, %c0_i32_0 : i32, i32
  }
  func.func @transform_9(%arg0: i32, %arg1: i32, %arg2: i32) -> (i32, i32) {
    %c0_i32 = arith.constant 0 : i32
    %c0_i32_0 = arith.constant 0 : i32
    %c0_i32_1 = arith.constant 0 : i32
    return %c0_i32, %c0_i32_0 : i32, i32
  }
  func.func @transform_10(%arg0: i32, %arg1: i32, %arg2: i32) -> (i32, i32) {
    %c0_i32 = arith.constant 0 : i32
    %c0_i32_0 = arith.constant 0 : i32
    %c0_i32_1 = arith.constant 0 : i32
    return %c0_i32, %c0_i32_0 : i32, i32
  }
  func.func @transform_11(%arg0: i32, %arg1: i32, %arg2: i32) -> (i32, i32) {
    %c0_i32 = arith.constant 0 : i32
    %c0_i32_0 = arith.constant 0 : i32
    %c0_i32_1 = arith.constant 0 : i32
    return %c0_i32, %c0_i32_0 : i32, i32
  }
}

</mosaic_0001>

<bundles_post_ra>
// kernel: tpu_custom_call.1
= control target key start
LH: loop header
LB: loop body
LE: loop exit
PB: predicated region body
PF: predicated region fallthrough
CT: control target
= control target key end

     0   :  { %s3541_s0 = inlined_call_operand.hbm [shape: f32[256,128], index: 0, kind: input, shape index: {}]   ;;  %s3542_s1 = inlined_call_operand.hbm [shape: bf16[256,256], index: 1, kind: input, shape index: {}]   ;;  %s3543_s2 = inlined_call_operand.hbm [shape: f32[16,256], index: 2, kind: input, shape index: {}]   ;;  %s3544_s3 = inlined_call_operand.hbm [shape: f32[128,128], index: 3, kind: input, shape index: {}]   ;;  %s3545_s4 = inlined_call_operand.vmem [shape: f32[1,128], index: 4, kind: input, shape index: {}]   ;;  %s3546_s5 = inlined_call_operand.hbm [shape: f32[4,128,128], index: 5, kind: input, shape index: {}]   ;;  %s3547_s6 = inlined_call_operand.vmem [shape: f32[4,1,128], index: 6, kind: input, shape index: {}]   ;;  %s3548_s7 = inlined_call_operand.hbm [shape: f32[128,128], index: 7, kind: input, shape index: {}]   ;;  %s3549_s8 = inlined_call_operand.vmem [shape: f32[1,128], index: 8, kind: input, shape index: {}]   ;;  %s3550_s9 = inlined_call_operand.hbm [shape: f32[128,128], index: 9, kind: input, shape index: {}]   ;;  %s3551_s10 = inlined_call_operand.vmem [shape: f32[1,128], index: 10, kind: input, shape index: {}]   ;;  %s3552_s11 = inlined_call_operand.hbm [shape: f32[16,128], index: 11, kind: output, shape index: {}]  }
   0x1   :  { %3564 = sst [smem:[#allocation30_spill]] %s3541_s0 }
   0x2   :  { %3565 = sst [smem:[#allocation31_spill]] %s3543_s2 }
   0x3   :  { %3566 = sst [smem:[#allocation32_spill]] %s3544_s3 }
   0x4   :  { %3567 = sst [smem:[#allocation33_spill]] %s3545_s4 }
   0x5   :  { %3568 = sst [smem:[#allocation34_spill]] %s3547_s6 }
   0x6   :  { %3569 = sst [smem:[#allocation35_spill]] %s3548_s7 }
   0x7   :  { %3570 = sst [smem:[#allocation36_spill]] %s3549_s8 }
   0x8   :  { %3571 = sst [smem:[#allocation37_spill]] %s3550_s9 }
   0x9   :  { %3572 = sst [smem:[#allocation38_spill]] %s3551_s10 }
   0xa   :  { %3573 = sst [smem:[#allocation39_spill]] %s3552_s11 }
   0xb   :  { %16 = vsyncpa [#allocation5], 0 }
   0xc   :  { %17 = vsyncpa [#allocation8], 0 }
   0xd   :  { %19 = vsyncpa [#allocation8 + $0x1], 0 }
   0xe   :  { %20 = vsyncpa [#allocation11], 0 }
   0xf   :  { %21 = vsyncpa [#allocation6], 0  ;;  %s3022_s17 = smov 0   ;;  %s3024_s18 = smov 0  }
  0x10   :  { %s3026_s19 = smov 0   ;;  %s3028_s20 = smov 0  }
  0x11   :  { %s3030_s21 = smov 0   ;;  %s3032_s22 = smov 0  }
  0x12   :  { %s3034_s23 = smov 0   ;;  %s3036_s24 = smov 0  }
  0x13   :  { %s3038_s25 = smov 0   ;;  %s3040_s26 = smov 0  }
  0x14   :  { %s3042_s27 = smov 0   ;;  %s3044_s28 = smov 0  }
  0x15   :  { %s3046_s29 = smov 0  }
  0x16 LB: > { %3574 = sst [smem:[#allocation24_spill]] %s2911_s21  ;;  %s2945_s30 = smov [#allocation9]   ;;  %s2943_s29 = sphi %s3046_s29, %s27_s29   ;;  %s2939_s28 = sphi %s3044_s28, %s3640_s28   ;;  %s2935_s27 = sphi %s3042_s27, %s3639_s27   ;;  %s2931_s26 = sphi %s3040_s26, %s3638_s26   ;;  %s2927_s25 = sphi %s3038_s25, %s3637_s25   ;;  %s2923_s24 = sphi %s3036_s24, %s3636_s24   ;;  %s2919_s23 = sphi %s3034_s23, %s3635_s23   ;;  %s2915_s22 = sphi %s3032_s22, %s3634_s22   ;;  %s2911_s21 = sphi %s3030_s21, %s3633_s21   ;;  %s2907_s20 = sphi %s3028_s20, %s3632_s20   ;;  %s2903_s19 = sphi %s3026_s19, %s3631_s19   ;;  %s2899_s18 = sphi %s3024_s18, %s3630_s18   ;;  %s2895_s17 = sphi %s3022_s17, %s3629_s17  }
  0x17   : > { %3575 = sst [smem:[#allocation25_spill]] %s2919_s23  ;;  %s345_s12 = sshll.u32 %s2945_s30, 4  ;;  %s346_s12 = int_to_ptr.vmem [resolvable:$true] %s345_s12 }
  0x18   : > { %3576 = sst [smem:[#allocation26_spill]] %s2923_s24  ;;  %s3088_s13 = sadd.s32 4294967295, %s2943_s29  }
  0x19   : > { %3577 = sst [smem:[#allocation27_spill]] %s2927_s25  ;;  %p1863_p0 = scmp.ge.s32.totalorder %s2943_s29, 1 }
  0x1a   : > { %p3563_p1 = scmp.eq.s32.totalorder %s3088_s13, 0  ;;  %p320_p2 = scmp.lt.s32.totalorder %s2943_s29, 17 }
  0x1b   : > { %s2610_s30 = scalar_lea.vmem %s346_s12, 512  ;;  %p2618_p10 = scmp.lt.s32.totalorder %s346_s12, %s346_s12 }
  0x1c   : > { %p3093_p3 = pnand %p1863_p0, %p320_p2  ;;  %p2611_p7 = scmp.ne.s32.totalorder %s346_s12, %s2610_s30 }
  0x1d   : > { %p2619_p11 = scmp.lt.s32.totalorder %s2610_s30, %s2610_s30 }
  0x1e   : > { %s3578_s14 = scalar_select %p3093_p3, 1, 0 }
  0x1f   : > { %p2428_p4 = pneg %p3093_p3  ;;  %p2620_p12 = por %p2619_p11, %p2618_p10 }
  0x20   : > { %3579 = sst [smem:[#allocation28_spill]] %s3578_s14 }
  0x21   : > { %p3101_p5 = pnand %p2428_p4, %p3563_p1 }
  0x23   : > { %p3107_p6 = pneg %p3101_p5 }
  0x25   : > { %p2613_p8 = pnand %p2611_p7, %p3107_p6 }
  0x27   : > { %p2614_p9 = pneg %p2613_p8 }
  0x29   : > { %p2621_p13 = pnand %p2620_p12, %p2614_p9 }
  0x2b   : > { %2624 = shalt.err (!%p2621_p13)
}
  0x2c   : > { %s2946_s11 = smov 256   ;;  %s2947_s10 = smov 16  }
  0x2d   : > { %s3582_s2 = sld [smem:[#allocation31_spill]]  ;;  %s2948_s6 = smov [#allocation4]  }
  0x2e   : > { %s332_s23 = sshll.u32 %s2948_s6, 4  ;;  %s333_s23 = int_to_ptr.vmem [resolvable:$true] %s332_s23 }
  0x2f   : > { %s2636_s24 = scalar_lea.vmem %s333_s23, 4096  ;;  %p2644_p7 = scmp.lt.s32.totalorder %s333_s23, %s333_s23 }
  0x30   : > { %p2637_p0 = scmp.ne.s32.totalorder %s333_s23, %s2636_s24  ;;  %p2645_p8 = scmp.lt.s32.totalorder %s2636_s24, %s2636_s24 }
  0x32   : > { %p2639_p2 = pnand %p2637_p0, %p3107_p6  ;;  %p2646_p9 = por %p2645_p8, %p2644_p7 }
  0x33   : > { %2434 = dma.hbm_to_vmem [thread:$0]  (!%p3101_p5), %s3582_s2, 512, %s346_s12, [#allocation8], %s2946_s11, %s2946_s11, %s2947_s10  }
  0x34   : > { %p2640_p4 = pneg %p2639_p2 }
  0x36   : > { %p2647_p10 = pnand %p2646_p9, %p2640_p4 }
  0x38   : > { %2650 = shalt.err (!%p2647_p10)
}
  0x39   : > { %s3558_s30 = smov 128   ;;  %s3557_s25 = smov 8  }
  0x3a   : > { %s3583_s0 = sld [smem:[#allocation30_spill]]  ;;  %s2951_s8 = smov [#allocation10]  }
  0x3b   : > { %s358_s10 = sshll.u32 %s2951_s8, 4  ;;  %s2952_s11 = smov [#allocation13]   ;;  %s359_s10 = int_to_ptr.vmem [resolvable:$true] %s358_s10 }
  0x3c   : > { %s374_s12 = sshll.u32 %s2952_s11, 4  ;;  %s2662_s24 = scalar_lea.vmem %s359_s10, 2048  ;;  %s375_s12 = int_to_ptr.vmem [resolvable:$true] %s374_s12 }
  0x3d   : > { %p2663_p11 = scmp.ne.s32.totalorder %s359_s10, %s2662_s24  ;;  %p2670_p0 = scmp.lt.s32.totalorder %s359_s10, %s359_s10 }
  0x3e   : > { %p2671_p2 = scmp.lt.s32.totalorder %s2662_s24, %s2662_s24 }
  0x3f   : > { %p2665_p12 = pnand %p2663_p11, %p3107_p6 }
  0x40   : > { %2431 = dma.hbm_to_vmem [thread:$0]  (!%p3101_p5), %s3583_s0, 4096, %s333_s23, [#allocation5], %s3558_s30, %s3558_s30, %s3557_s25  }
  0x41   : > { %p2666_p13 = pneg %p2665_p12  ;;  %p2672_p4 = por %p2671_p2, %p2670_p0 }
  0x43   : > { %p2673_p7 = pnand %p2672_p4, %p2666_p13 }
  0x45   : > { %2676 = shalt.err (!%p2673_p7)
}
  0x46   : > { %s3584_s3 = sld [smem:[#allocation32_spill]]  ;;  %s2688_s6 = scalar_lea.vmem %s375_s12, 2048 }
  0x47   : > { %p2689_p8 = scmp.ne.s32.totalorder %s375_s12, %s2688_s6  ;;  %p2696_p11 = scmp.lt.s32.totalorder %s375_s12, %s375_s12 }
  0x48   : > { %p2697_p12 = scmp.lt.s32.totalorder %s2688_s6, %s2688_s6 }
  0x49   : > { %p2691_p9 = pnand %p2689_p8, %p3107_p6 }
  0x4a   : > { %p2698_p0 = por %p2697_p12, %p2696_p11 }
  0x4b   : > { %p2692_p10 = pneg %p2691_p9 }
  0x4c   : > { %2437 = dma.hbm_to_vmem [thread:$0]  (!%p3101_p5), %s3584_s3, 2048, %s359_s10, [#allocation11], %s3558_s30, %s3558_s30, %s3557_s25  }
  0x4d   : > { %p2699_p13 = pnand %p2698_p0, %p2692_p10 }
  0x4f   : > { %2702 = shalt.err (!%p2699_p13)
}
  0x50   : > { %s3585_s7 = sld [smem:[#allocation35_spill]]  ;;  %s2953_s10 = smov [#allocation14]  }
  0x51   : > { %s390_s24 = sshll.u32 %s2953_s10, 4  ;;  %s391_s24 = int_to_ptr.vmem [resolvable:$true] %s390_s24 }
  0x52   : > { %s2714_s23 = scalar_lea.vmem %s391_s24, 2048  ;;  %p2722_p8 = scmp.lt.s32.totalorder %s391_s24, %s391_s24 }
  0x53   : > { %p2715_p2 = scmp.ne.s32.totalorder %s391_s24, %s2714_s23  ;;  %p2723_p9 = scmp.lt.s32.totalorder %s2714_s23, %s2714_s23 }
  0x55   : > { %p2717_p4 = pnand %p2715_p2, %p3107_p6  ;;  %p2724_p10 = por %p2723_p9, %p2722_p8 }
  0x56   : > { %2440 = dma.hbm_to_vmem [thread:$0]  (!%p3101_p5), %s3585_s7, 2048, %s375_s12, [#allocation8], %s3558_s30, %s3558_s30, %s3557_s25  }
  0x57   : > { %p2718_p7 = pneg %p2717_p4 }
  0x59   : > { %p2725_p11 = pnand %p2724_p10, %p2718_p7 }
  0x5b   : > { %2728 = shalt.err (!%p2725_p11)
}
  0x5c   : > { %s3586_s9 = sld [smem:[#allocation37_spill]]  ;;  %s39_s15 = sadd.s32 1, %s2931_s26 }
  0x5d   : > { %p40_p6 = scmp.ge.s32.totalorder %s39_s15, 2  ;;  %s42_s16 = sadd.s32 1, %s2935_s27 }
  0x5e   : > { %s76_s6 = sadd.s32 1, %s2915_s22  ;;  %p83_p12 = scmp.ne.s32.totalorder %s2915_s22, %s2911_s21 }
  0x5f   : > { %s3642_s15 = smov (%p40_p6, %s39_s15), 0  ;;  %s3644_s16 = smov (!%p40_p6, %s42_s16), %s2935_s27 }
  0x60   : > { %3587 = sst [smem:[#allocation29_spill]] %s3642_s15  ;;  %s72_s8 = ssub.s32 %s2931_s26, %s3642_s15 }
  0x61   : > { %p44_p0 = scmp.ge.s32.totalorder %s3644_s16, 2  ;;  %p89_p13 = scmp.ne.s32.totalorder %s2911_s21, %s2907_s20 }
  0x62   : > { %2443 = dma.hbm_to_vmem [thread:$0]  (!%p3101_p5), %s3586_s9, 2048, %s391_s24, [#allocation11], %s3558_s30, %s3558_s30, %s3557_s25  }
  0x63   : > { %p84_p5 = scmp.eq.s32.totalorder %s2943_s29, 0  ;;  %p2456_p4 = scmp.lt.s32.totalorder %s2943_s29, 16 }
  0x64   : > { %s3184_s10 = scalar_select %p44_p0, 0, %s3644_s16  }
  0x65   : > { %p3176_p2 = por %p84_p5, %p83_p12  ;;  %p3188_p7 = por %p3563_p1, %p89_p13 }
  0x66   : > { %s71_s20 = ssub.s32 %s2935_s27, %s3184_s10  ;;  %s409_s12 = sand.u32 1, %s2915_s22  }
  0x67   : > { %s73_s4 = sor.u32 %s72_s8, %s71_s20  ;;  %s1870_s25 = sshll.u32 %s409_s12, 6 }
  0x68   : > { %p74_p8 = scmp.eq.s32.totalorder %s73_s4, 0  ;;  %s1910_s30 = sshll.u32 %s2935_s27, 5 }
  0x69   : > { %s417_s2 = sadd.s32 %s2931_s26, %s1910_s30  ;;  %s411_s3 = scalar_lea.vmem [#allocation7], %s1870_s25 }
  0x6a   : > { %s3198_s0 = scalar_select %p74_p8, %s2915_s22, %s76_s6  }
  0x6b   : > { %s420_s7 = sshll.u32 %s411_s3, 4  ;;  %s1873_s9 = sshll.u32 %s417_s2, 6  ;;  %s421_s7 = int_to_ptr.vmem [resolvable:$true] %s420_s7 }
  0x6c   : > { %s419_s14 = scalar_lea.hbm %s3542_s1, %s1873_s9  ;;  %p3208_p9 = pnand %p2456_p4, %p3176_p2 }
  0x6d   : > { %s3591_s8 = sand.u32 1, %s2943_s29   ;;  %s2742_s30 = scalar_lea.vmem %s421_s7, 1024 }
  0x6e   : > { %s408_s20 = scalar_lea.sflag [#allocation8], %s3591_s8  ;;  %p2731_p10 = pneg %p3208_p9 }
  0x6f   : > { %p2743_p11 = scmp.ne.s32.totalorder %s421_s7, %s2742_s30  ;;  %s2954_s2 = smov [#allocation7]  }
  0x70   : > { %s2747_s3 = sshll.u32 %s2954_s2, 4  ;;  %s2748_s3 = int_to_ptr.vmem [resolvable:$false] %s2747_s3 }
  0x71   : > { %p2745_p6 = pnand %p2743_p11, %p2731_p10  ;;  %s2749_s21 = scalar_lea.vmem %s2748_s3, 2048 }
  0x72   : > { %p2750_p13 = scmp.lt.s32.totalorder %s421_s7, %s2748_s3  ;;  %p2751_p8 = scmp.lt.s32.totalorder %s2749_s21, %s2742_s30 }
  0x73   : > { %p2746_p12 = pneg %p2745_p6 }
  0x74   : > { %p2752_p1 = por %p2751_p8, %p2750_p13 }
  0x76   : > { %p2753_p2 = pnand %p2752_p1, %p2746_p12 }
  0x78   : > { %2756 = shalt.err (!%p2753_p2)
}
  0x79   : > { %s2955_s9 = smov 64   ;;  %s2956_s25 = smov 4  }
  0x7a   : > { %s3592_s15 = smov 128   ;;  %s46_s6 = sadd.s32 1, %s2939_s28 }
  0x7b   : > { %2447 = dma.hbm_to_vmem [thread:$0]  (!%p3208_p9), %s419_s14, 1024, %s421_s7, %s408_s20, %s3592_s15, %s2955_s9, %s2956_s25  }
  0x7c   : > { %s3646_s6 = smov (!%p44_p0, %s46_s6), %s2939_s28  ;;  %p172_p1 = scmp.ne.s32.totalorder %s2903_s19, %s2899_s18 }
  0x7d   : > { %p48_p10 = scmp.ge.s32.totalorder %s3646_s6, 4  ;;  %p178_p11 = scmp.ne.s32.totalorder %s2899_s18, %s2895_s17 }
  0x7e   : > { %s165_s11 = sadd.s32 1, %s2903_s19  ;;  %p3230_p6 = por %p172_p1, %p84_p5 }
  0x7f   : > { %s3648_s6 = smov (%p48_p10, %s3646_s6), 0  ;;  %p3594_p12 = scmp.eq.s32.totalorder %s3088_s13, 0 }
  0x80   : > { %s432_s14 = sand.u32 1, %s2903_s19   ;;  %s162_s16 = ssub.s32 %s2939_s28, %s3648_s6 }
  0x81   : > { %p3238_p9 = por %p178_p11, %p3594_p12  ;;  %s1874_s23 = sshll.u32 %s432_s14, 7 }
  0x82   : > { %p163_p0 = scmp.eq.s32.totalorder %s162_s16, 0  ;;  %s1911_s17 = sshll.u32 %s2939_s28, 11 }
  0x83   : > { %s434_s12 = scalar_lea.vmem [#allocation12], %s1874_s23  ;;  %s440_s3 = scalar_lea.hbm %s3546_s5, %s1911_s17 }
  0x84   : > { %s441_s8 = sshll.u32 %s434_s12, 4  ;;  %p3256_p5 = pnand %p2456_p4, %p3230_p6  ;;  %s442_s8 = int_to_ptr.vmem [resolvable:$true] %s441_s8 }
  0x85   : > { %s3247_s20 = scalar_select %p163_p0, %s2903_s19, %s165_s11  }
  0x86   : > { %s3597_s9 = sand.u32 1, %s2943_s29   ;;  %p2759_p13 = pneg %p3256_p5 }
  0x87   : > { %s431_s25 = scalar_lea.sflag [#allocation5], %s3597_s9  ;;  %s2770_s14 = scalar_lea.vmem %s442_s8, 2048 }
  0x88   : > { %p2771_p8 = scmp.ne.s32.totalorder %s442_s8, %s2770_s14  ;;  %s2957_s11 = smov [#allocation12]  }
  0x89   : > { %s2775_s16 = sshll.u32 %s2957_s11, 4  ;;  %s2776_s16 = int_to_ptr.vmem [resolvable:$false] %s2775_s16 }
  0x8a   : > { %p2773_p2 = pnand %p2771_p8, %p2759_p13  ;;  %s2777_s23 = scalar_lea.vmem %s2776_s16, 4096 }
  0x8b   : > { %p2778_p10 = scmp.lt.s32.totalorder %s442_s8, %s2776_s16  ;;  %p2779_p11 = scmp.lt.s32.totalorder %s2777_s23, %s2770_s14 }
  0x8c   : > { %p2774_p1 = pneg %p2773_p2 }
  0x8d   : > { %p2780_p12 = por %p2779_p11, %p2778_p10 }
  0x8f   : > { %p2781_p4 = pnand %p2780_p12, %p2774_p1 }
  0x91   : > { %2784 = shalt.err (!%p2781_p4)
}
  0x92   : > { %s3598_s4 = smov 8   ;;  %459 = sbr.rel (%p3093_p3) target bundleno = 1966 (0x7ae), region = 64 }
  0x93   : > { %2450 = dma.hbm_to_vmem [thread:$0]  (!%p3256_p5), %s440_s3, 2048, %s442_s8, %s431_s25, %s3592_s15, %s3592_s15, %s3598_s4  }
  0x94   : > { %p3600_p6 = scmp.eq.s32.totalorder (!%p3093_p3), %s3088_s13, 0 }
  0x97   : > { %2862 = dma.done.wait (%p3600_p6), [#allocation5], 4096   ;;  %p3601_p0 = pmov %p3600_p6 }
  0x98   : > { %s3602_s12 = sld [smem:[#allocation24_spill]]  ;;  %s465_s30 = sand.u32 1, %s3088_s13  }
  0x99   : > { %2864 = vsyncadd (%p3601_p0), [#allocation5], 4294963200  ;;  %s466_s21 = scalar_lea.sflag [#allocation8], %s465_s30 }
  0x9e   : > { %s467_s2 = sand.u32 1, %s3602_s12  }
  0x9f   : > { %s1879_s9 = sshll.u32 %s467_s2, 6 }
  0xa0   : > { %s3277_s14 = scalar_lea.vmem [#allocation7], %s1879_s9 }
  0xa1   : > { %2866 = dma.done.wait (%p3188_p7), %s466_s21, 1024  }
  0xa2   : > { %2868 = vsyncadd (%p3188_p7), %s466_s21, 4294966272  ;;  %p3603_p3 = pmov %p3601_p0 }
  0xa3   : > { %p3604_p5 = pmov %p3601_p0 }
  0xa4   : > { %2870 = dma.done.wait (%p3603_p3), [#allocation8], 512  }
  0xa5   : > { %2872 = vsyncadd (%p3604_p5), [#allocation8], 4294966784  ;;  %p3605_p13 = pmov %p3601_p0 }
  0xa6   : > { %p3606_p8 = pmov %p3601_p0 }
  0xa7   : > { %2874 = dma.done.wait (%p3605_p13), [#allocation11], 2048  }
  0xa8   : > { %2876 = vsyncadd (%p3606_p8), [#allocation11], 4294965248  ;;  %s484_s15 = sand.u32 1, %s2899_s18   ;;  %s483_s3 = scalar_lea.sflag [#allocation5], %s465_s30 }
  0xa9   : > { %s1882_s8 = sshll.u32 %s484_s15, 7 }
  0xaa   : > { %s3292_s25 = scalar_lea.vmem [#allocation12], %s1882_s8 }
  0xab   : > { %2878 = dma.done.wait (%p3238_p9), %s483_s3, 2048  }
  0xac   : > { %2880 = vsyncadd (%p3238_p9), %s483_s3, 4294965248  ;;  %p3607_p7 = pmov %p3601_p0 }
  0xad   : > { %p3608_p2 = pmov %p3601_p0 }
  0xae   : > { %2882 = dma.done.wait (%p3607_p7), [#allocation8], 2048  }
  0xaf   : > { %2884 = vsyncadd (%p3608_p2), [#allocation8], 4294965248  ;;  %p3609_p1 = pmov %p3601_p0 }
  0xb0   : > { %p3610_p10 = pmov %p3601_p0 }
  0xb1   : > { %2886 = dma.done.wait (%p3609_p1), [#allocation11], 2048  }
  0xb2   : > { %2888 = vsyncadd (%p3610_p10), [#allocation11], 4294965248  ;;  %s3611_s24 = sld [smem:[#allocation27_spill]] }
  0xb3   : > { %s3612_s11 = sld [smem:[#allocation26_spill]] }
  0xb4   : > { %s3613_s16 = sld [smem:[#allocation25_spill]] }
  0xb5   : > { %s3614_s4 = sld [smem:[#allocation34_spill]] }
  0xb8   : > { %p537_p11 = scmp.lt.s32.totalorder %s3611_s24, 3  ;;  %p541_p12 = scmp.eq.s32.totalorder %s3611_s24, 0 }
  0xb9   : > { %p542_p9 = scmp.eq.s32.totalorder %s3612_s11, 0 }
  0xba   : > { %s3650_s24 = smov (!%p537_p11, %s3611_s24), 3  ;;  %p545_p6 = scmp.eq.s32.totalorder %s3613_s16, 0 }
  0xbb   : > { %p543_p4 = pnand %p542_p9, %p541_p12  ;;  %s539_s17 = scalar_lea.vmem %s3614_s4, %s3650_s24 }
  0xbd   : > { %p544_p0 = pneg %p543_p4 }
  0xbf   : > { %p546_p3 = pnand %p545_p6, %p544_p0 }
  0xc0   : > { %s3615_s2 = sld [smem:[#allocation33_spill]] (!%p546_p3) }
  0xc1   : > { %549 = sbr.rel (%p546_p3) target bundleno = 458 (0x1ca), region = 96 }
  0xc6   : > { %v597_v0 = vld [vmem:[#allocation10 + $0x78] sm:$0xff]  ;;  %v596_v1 = vld [vmem:[#allocation10 + $0x70] sm:$0xff]  ;;  %v595_v2 = vld [vmem:[#allocation10 + $0x68] sm:$0xff] }
  0xc7   : > { %2082 = vmatprep.subr.mxu0 %v597_v0  ;;  %2320 = vmatprep.subr.mxu1 %v597_v0  ;;  %v594_v3 = vld [vmem:[#allocation10 + $0x60] sm:$0xff]  ;;  %v593_v4 = vld [vmem:[#allocation10 + $0x58] sm:$0xff]  ;;  %v592_v5 = vld [vmem:[#allocation10 + $0x50] sm:$0xff] }
  0xc8   : > { %2083 = vmatpush3.msra.mxu0 %v597_v0  ;;  %2336 = vmatpush3.msra.mxu1 %v597_v0  ;;  %v591_v6 = vld [vmem:[#allocation10 + $0x48] sm:$0xff]  ;;  %v590_v7 = vld [vmem:[#allocation10 + $0x40] sm:$0xff]  ;;  %v589_v8 = vld [vmem:[#allocation10 + $0x38] sm:$0xff] }
  0xc9   : > { %2084 = vmatprep.subr.mxu0 %v596_v1  ;;  %2321 = vmatprep.subr.mxu1 %v596_v1  ;;  %v588_v9 = vld [vmem:[#allocation10 + $0x30] sm:$0xff]  ;;  %v587_v10 = vld [vmem:[#allocation10 + $0x28] sm:$0xff]  ;;  %v586_v11 = vld [vmem:[#allocation10 + $0x20] sm:$0xff] }
  0xca   : > { %2085 = vmatpush3.msra.mxu0 %v596_v1  ;;  %2337 = vmatpush3.msra.mxu1 %v596_v1  ;;  %v585_v12 = vld [vmem:[#allocation10 + $0x18] sm:$0xff]  ;;  %v584_v13 = vld [vmem:[#allocation10 + $0x10] sm:$0xff]  ;;  %v583_v14 = vld [vmem:[#allocation10 + $0x8] sm:$0xff] }
  0xcb   : > { %2086 = vmatprep.subr.mxu0 %v595_v2  ;;  %2322 = vmatprep.subr.mxu1 %v595_v2  ;;  %v582_v15 = vld [vmem:[#allocation10] sm:$0xff]  ;;  %v551_v18 = vld [vmem:[#allocation4 + $0x8] sm:$0xff]  ;;  %v552_v20 = vld [vmem:[#allocation4 + $0x10] sm:$0xff] }
  0xcc   : > { %2087 = vmatpush3.msra.mxu0 %v595_v2  ;;  %2338 = vmatpush3.msra.mxu1 %v595_v2  ;;  %v550_v16 = vld [vmem:[#allocation4] sm:$0xff]  ;;  %v567_v19 = vld [vmem:[#allocation4 + $0x88] sm:$0xff]  ;;  %v568_v21 = vld [vmem:[#allocation4 + $0x90] sm:$0xff] }
  0xcd   : > { %2088 = vmatprep.subr.mxu0 %v594_v3  ;;  %2323 = vmatprep.subr.mxu1 %v594_v3  ;;  %v566_v17 = vld [vmem:[#allocation4 + $0x80] sm:$0xff]  ;;  %v553_v22 = vld [vmem:[#allocation4 + $0x18] sm:$0xff]  ;;  %v555_v26 = vld [vmem:[#allocation4 + $0x28] sm:$0xff] }
  0xce   : > { %2089 = vmatpush3.msra.mxu0 %v594_v3  ;;  %2339 = vmatpush3.msra.mxu1 %v594_v3  ;;  %v569_v23 = vld [vmem:[#allocation4 + $0x98] sm:$0xff]  ;;  %v554_v24 = vld [vmem:[#allocation4 + $0x20] sm:$0xff]  ;;  %v571_v27 = vld [vmem:[#allocation4 + $0xa8] sm:$0xff] }
  0xcf   : > { %2090 = vmatprep.subr.mxu0 %v593_v4  ;;  %2324 = vmatprep.subr.mxu1 %v593_v4  ;;  %v570_v25 = vld [vmem:[#allocation4 + $0xa0] sm:$0xff]  ;;  %v556_v28 = vld [vmem:[#allocation4 + $0x30] sm:$0xff]  ;;  %v557_v30 = vld [vmem:[#allocation4 + $0x38] sm:$0xff] }
  0xd0   : > { %2091 = vmatpush3.msra.mxu0 %v593_v4  ;;  %2340 = vmatpush3.msra.mxu1 %v593_v4  ;;  %v572_v29 = vld [vmem:[#allocation4 + $0xb0] sm:$0xff]  ;;  %v573_v31 = vld [vmem:[#allocation4 + $0xb8] sm:$0xff]  ;;  %v558_v32 = vld [vmem:[#allocation4 + $0x40] sm:$0xff] }
  0xd1   : > { %2092 = vmatprep.subr.mxu0 %v592_v5  ;;  %2325 = vmatprep.subr.mxu1 %v592_v5  ;;  %v574_v33 = vld [vmem:[#allocation4 + $0xc0] sm:$0xff]  ;;  %v559_v34 = vld [vmem:[#allocation4 + $0x48] sm:$0xff]  ;;  %v560_v36 = vld [vmem:[#allocation4 + $0x50] sm:$0xff] }
  0xd2   : > { %2093 = vmatpush3.msra.mxu0 %v592_v5  ;;  %2341 = vmatpush3.msra.mxu1 %v592_v5  ;;  %v575_v35 = vld [vmem:[#allocation4 + $0xc8] sm:$0xff]  ;;  %v576_v37 = vld [vmem:[#allocation4 + $0xd0] sm:$0xff]  ;;  %v561_v38 = vld [vmem:[#allocation4 + $0x58] sm:$0xff] }
  0xd3   : > { %2094 = vmatprep.subr.mxu0 %v591_v6  ;;  %2326 = vmatprep.subr.mxu1 %v591_v6  ;;  %v577_v39 = vld [vmem:[#allocation4 + $0xd8] sm:$0xff]  ;;  %v562_v40 = vld [vmem:[#allocation4 + $0x60] sm:$0xff]  ;;  %v563_v42 = vld [vmem:[#allocation4 + $0x68] sm:$0xff] }
  0xd4   : > { %2095 = vmatpush3.msra.mxu0 %v591_v6  ;;  %2342 = vmatpush3.msra.mxu1 %v591_v6  ;;  %v578_v41 = vld [vmem:[#allocation4 + $0xe0] sm:$0xff]  ;;  %v579_v43 = vld [vmem:[#allocation4 + $0xe8] sm:$0xff]  ;;  %v564_v44 = vld [vmem:[#allocation4 + $0x70] sm:$0xff] }
  0xd5   : > { %2096 = vmatprep.subr.mxu0 %v590_v7  ;;  %2327 = vmatprep.subr.mxu1 %v590_v7  ;;  %v580_v45 = vld [vmem:[#allocation4 + $0xf0] sm:$0xff]  ;;  %v565_v46 = vld [vmem:[#allocation4 + $0x78] sm:$0xff]  ;;  %v3320_v48 = vld [vmem:[%s3615_s2] ss:$0 sm:$0xff] }
  0xd6   : > { %2097 = vmatpush3.msra.mxu0 %v590_v7  ;;  %2343 = vmatpush3.msra.mxu1 %v590_v7  ;;  %v581_v47 = vld [vmem:[#allocation4 + $0xf8] sm:$0xff] }
  0xd7   : > { %2098 = vmatprep.subr.mxu0 %v589_v8  ;;  %2328 = vmatprep.subr.mxu1 %v589_v8 }
  0xd8   : > { %2099 = vmatpush3.msra.mxu0 %v589_v8  ;;  %2344 = vmatpush3.msra.mxu1 %v589_v8 }
  0xd9   : > { %2100 = vmatprep.subr.mxu0 %v588_v9  ;;  %2329 = vmatprep.subr.mxu1 %v588_v9 }
  0xda   : > { %2101 = vmatpush3.msra.mxu0 %v588_v9  ;;  %2345 = vmatpush3.msra.mxu1 %v588_v9 }
  0xdb   : > { %2102 = vmatprep.subr.mxu0 %v587_v10  ;;  %2330 = vmatprep.subr.mxu1 %v587_v10 }
  0xdc   : > { %2103 = vmatpush3.msra.mxu0 %v587_v10  ;;  %2346 = vmatpush3.msra.mxu1 %v587_v10 }
  0xdd   : > { %2104 = vmatprep.subr.mxu0 %v586_v11  ;;  %2331 = vmatprep.subr.mxu1 %v586_v11 }
  0xde   : > { %2105 = vmatpush3.msra.mxu0 %v586_v11  ;;  %2347 = vmatpush3.msra.mxu1 %v586_v11 }
  0xdf   : > { %2106 = vmatprep.subr.mxu0 %v585_v12  ;;  %2332 = vmatprep.subr.mxu1 %v585_v12 }
  0xe0   : > { %2107 = vmatpush3.msra.mxu0 %v585_v12  ;;  %2348 = vmatpush3.msra.mxu1 %v585_v12 }
  0xe1   : > { %2108 = vmatprep.subr.mxu0 %v584_v13  ;;  %2333 = vmatprep.subr.mxu1 %v584_v13 }
  0xe2   : > { %2109 = vmatpush3.msra.mxu0 %v584_v13  ;;  %2349 = vmatpush3.msra.mxu1 %v584_v13 }
  0xe3   : > { %2110 = vmatprep.subr.mxu0 %v583_v14  ;;  %2334 = vmatprep.subr.mxu1 %v583_v14 }
  0xe4   : > { %2111 = vmatpush3.msra.mxu0 %v583_v14  ;;  %2350 = vmatpush3.msra.mxu1 %v583_v14 }
  0xe5   : > { %2112 = vmatprep.subr.mxu0 %v582_v15  ;;  %2335 = vmatprep.subr.mxu1 %v582_v15 }
  0xe6   : > { %2113 = vmatpush3.msra.mxu0 %v582_v15  ;;  %2351 = vmatpush3.msra.mxu1 %v582_v15 }
  0xe7   : > { %2114 = vmatprep.mubr.f32.mxu0 %v550_v16  ;;  %2138 = vmatprep.mubr.f32.mxu1 %v566_v17 }
  0xe8   : > { %2115 = vmatmul.mubr.f32.vlgmr.msra.gmra.mxu0 %v551_v18  ;;  %2139 = vmatmul.mubr.f32.vlgmr.msra.gmra.mxu1 %v567_v19 }
  0xe9   : > { %2117 = vmatprep.mubr.f32.mxu0 %v552_v20  ;;  %2141 = vmatprep.mubr.f32.mxu1 %v568_v21 }
  0xec   : > { %2118 = vmatmul.mubr.f32.gmra.mxu0 %v553_v22  ;;  %2142 = vmatmul.mubr.f32.gmra.mxu1 %v569_v23 }
  0xed   : > { %2120 = vmatprep.mubr.f32.mxu0 %v554_v24  ;;  %2144 = vmatprep.mubr.f32.mxu1 %v570_v25 }
  0xf0   : > { %2121 = vmatmul.mubr.f32.gmra.mxu0 %v555_v26  ;;  %2145 = vmatmul.mubr.f32.gmra.mxu1 %v571_v27 }
  0xf1   : > { %2123 = vmatprep.mubr.f32.mxu0 %v556_v28  ;;  %2147 = vmatprep.mubr.f32.mxu1 %v572_v29 }
  0xf4   : > { %2124 = vmatmul.mubr.f32.gmra.mxu0 %v557_v30  ;;  %2148 = vmatmul.mubr.f32.gmra.mxu1 %v573_v31 }
  0xf5   : > { %2126 = vmatprep.mubr.f32.mxu0 %v558_v32  ;;  %2150 = vmatprep.mubr.f32.mxu1 %v574_v33 }
  0xf8   : > { %2127 = vmatmul.mubr.f32.gmra.mxu0 %v559_v34  ;;  %2151 = vmatmul.mubr.f32.gmra.mxu1 %v575_v35 }
  0xf9   : > { %2129 = vmatprep.mubr.f32.mxu0 %v560_v36  ;;  %2153 = vmatprep.mubr.f32.mxu1 %v576_v37 }
  0xfc   : > { %2130 = vmatmul.mubr.f32.gmra.mxu0 %v561_v38  ;;  %2154 = vmatmul.mubr.f32.gmra.mxu1 %v577_v39 }
  0xfd   : > { %2132 = vmatprep.mubr.f32.mxu0 %v562_v40  ;;  %2156 = vmatprep.mubr.f32.mxu1 %v578_v41 }
 0x100   : > { %2133 = vmatmul.mubr.f32.gmra.mxu0 %v563_v42  ;;  %2157 = vmatmul.mubr.f32.gmra.mxu1 %v579_v43 }
 0x101   : > { %2135 = vmatprep.mubr.f32.mxu0 %v564_v44  ;;  %2159 = vmatprep.mubr.f32.mxu1 %v580_v45 }
 0x104   : > { %2136 = vmatmul.mubr.f32.gmra.mxu0 %v565_v46  ;;  %2160 = vmatmul.mubr.f32.gmra.mxu1 %v581_v47 }
 0x1a8   : > { %v2116_v49 = vpop.f32.mrf.mxu0  ;;  %v2140_v50 = vpop.f32.mrf.mxu1 }
 0x1a9   : > { %v677_v51 = vadd.f32 %v2116_v49, %v3320_v48  ;;  %v757_v52 = vadd.f32 %v2140_v50, %v3320_v48 }
 0x1aa   : > { %v671_v53 = vpop.f32.mrf.mxu0  ;;  %v751_v54 = vpop.f32.mrf.mxu1 }
 0x1ab   : > { %831 = vst [vmem:[#allocation2 + $0x8] sm:$0xff] %v677_v51  ;;  %847 = vst [vmem:[#allocation2 + $0x88] sm:$0xff] %v757_v52  ;;  %v672_v55 = vadd.f32 %v3320_v48, %v671_v53  ;;  %v752_v56 = vadd.f32 %v3320_v48, %v751_v54 }
 0x1ac   : > { %v2119_v57 = vpop.f32.mrf.mxu0  ;;  %v2143_v58 = vpop.f32.mrf.mxu1 }
 0x1ad   : > { %830 = vst [vmem:[#allocation2] sm:$0xff] %v672_v55  ;;  %846 = vst [vmem:[#allocation2 + $0x80] sm:$0xff] %v752_v56  ;;  %v687_v59 = vadd.f32 %v2119_v57, %v3320_v48  ;;  %v767_v60 = vadd.f32 %v2143_v58, %v3320_v48 }
 0x1ae   : > { %v681_v61 = vpop.f32.mrf.mxu0  ;;  %v761_v62 = vpop.f32.mrf.mxu1 }
 0x1af   : > { %833 = vst [vmem:[#allocation2 + $0x18] sm:$0xff] %v687_v59  ;;  %849 = vst [vmem:[#allocation2 + $0x98] sm:$0xff] %v767_v60  ;;  %v682_v63 = vadd.f32 %v3320_v48, %v681_v61  ;;  %v762_v0 = vadd.f32 %v3320_v48, %v761_v62 }
 0x1b0   : > { %v2122_v1 = vpop.f32.mrf.mxu0  ;;  %v2146_v2 = vpop.f32.mrf.mxu1 }
 0x1b1   : > { %832 = vst [vmem:[#allocation2 + $0x10] sm:$0xff] %v682_v63  ;;  %848 = vst [vmem:[#allocation2 + $0x90] sm:$0xff] %v762_v0  ;;  %v697_v3 = vadd.f32 %v2122_v1, %v3320_v48  ;;  %v777_v4 = vadd.f32 %v2146_v2, %v3320_v48 }
 0x1b2   : > { %v691_v5 = vpop.f32.mrf.mxu0  ;;  %v771_v6 = vpop.f32.mrf.mxu1 }
 0x1b3   : > { %835 = vst [vmem:[#allocation2 + $0x28] sm:$0xff] %v697_v3  ;;  %851 = vst [vmem:[#allocation2 + $0xa8] sm:$0xff] %v777_v4  ;;  %v692_v7 = vadd.f32 %v3320_v48, %v691_v5  ;;  %v772_v8 = vadd.f32 %v3320_v48, %v771_v6 }
 0x1b4   : > { %v2125_v9 = vpop.f32.mrf.mxu0  ;;  %v2149_v10 = vpop.f32.mrf.mxu1 }
 0x1b5   : > { %834 = vst [vmem:[#allocation2 + $0x20] sm:$0xff] %v692_v7  ;;  %850 = vst [vmem:[#allocation2 + $0xa0] sm:$0xff] %v772_v8  ;;  %v707_v11 = vadd.f32 %v2125_v9, %v3320_v48  ;;  %v787_v12 = vadd.f32 %v2149_v10, %v3320_v48 }
 0x1b6   : > { %v701_v13 = vpop.f32.mrf.mxu0  ;;  %v781_v14 = vpop.f32.mrf.mxu1 }
 0x1b7   : > { %837 = vst [vmem:[#allocation2 + $0x38] sm:$0xff] %v707_v11  ;;  %853 = vst [vmem:[#allocation2 + $0xb8] sm:$0xff] %v787_v12  ;;  %v702_v15 = vadd.f32 %v3320_v48, %v701_v13  ;;  %v782_v16 = vadd.f32 %v3320_v48, %v781_v14 }
 0x1b8   : > { %v2128_v17 = vpop.f32.mrf.mxu0  ;;  %v2152_v18 = vpop.f32.mrf.mxu1 }
 0x1b9   : > { %836 = vst [vmem:[#allocation2 + $0x30] sm:$0xff] %v702_v15  ;;  %852 = vst [vmem:[#allocation2 + $0xb0] sm:$0xff] %v782_v16  ;;  %v717_v19 = vadd.f32 %v2128_v17, %v3320_v48  ;;  %v797_v20 = vadd.f32 %v2152_v18, %v3320_v48 }
 0x1ba   : > { %v711_v21 = vpop.f32.mrf.mxu0  ;;  %v791_v22 = vpop.f32.mrf.mxu1 }
 0x1bb   : > { %839 = vst [vmem:[#allocation2 + $0x48] sm:$0xff] %v717_v19  ;;  %855 = vst [vmem:[#allocation2 + $0xc8] sm:$0xff] %v797_v20  ;;  %v712_v23 = vadd.f32 %v3320_v48, %v711_v21  ;;  %v792_v24 = vadd.f32 %v3320_v48, %v791_v22 }
 0x1bc   : > { %v2131_v25 = vpop.f32.mrf.mxu0  ;;  %v2155_v26 = vpop.f32.mrf.mxu1 }
 0x1bd   : > { %838 = vst [vmem:[#allocation2 + $0x40] sm:$0xff] %v712_v23  ;;  %854 = vst [vmem:[#allocation2 + $0xc0] sm:$0xff] %v792_v24  ;;  %v727_v27 = vadd.f32 %v2131_v25, %v3320_v48  ;;  %v807_v28 = vadd.f32 %v2155_v26, %v3320_v48 }
 0x1be   : > { %v721_v29 = vpop.f32.mrf.mxu0  ;;  %v801_v30 = vpop.f32.mrf.mxu1 }
 0x1bf   : > { %841 = vst [vmem:[#allocation2 + $0x58] sm:$0xff] %v727_v27  ;;  %857 = vst [vmem:[#allocation2 + $0xd8] sm:$0xff] %v807_v28  ;;  %v722_v31 = vadd.f32 %v3320_v48, %v721_v29  ;;  %v802_v32 = vadd.f32 %v3320_v48, %v801_v30 }
 0x1c0   : > { %v2134_v33 = vpop.f32.mrf.mxu0  ;;  %v2158_v34 = vpop.f32.mrf.mxu1 }
 0x1c1   : > { %840 = vst [vmem:[#allocation2 + $0x50] sm:$0xff] %v722_v31  ;;  %856 = vst [vmem:[#allocation2 + $0xd0] sm:$0xff] %v802_v32  ;;  %v737_v35 = vadd.f32 %v2134_v33, %v3320_v48  ;;  %v817_v36 = vadd.f32 %v2158_v34, %v3320_v48 }
 0x1c2   : > { %v731_v37 = vpop.f32.mrf.mxu0  ;;  %v811_v38 = vpop.f32.mrf.mxu1 }
 0x1c3   : > { %843 = vst [vmem:[#allocation2 + $0x68] sm:$0xff] %v737_v35  ;;  %859 = vst [vmem:[#allocation2 + $0xe8] sm:$0xff] %v817_v36  ;;  %v732_v39 = vadd.f32 %v3320_v48, %v731_v37  ;;  %v812_v40 = vadd.f32 %v3320_v48, %v811_v38 }
 0x1c4   : > { %v2137_v41 = vpop.f32.mrf.mxu0  ;;  %v2161_v42 = vpop.f32.mrf.mxu1 }
 0x1c5   : > { %842 = vst [vmem:[#allocation2 + $0x60] sm:$0xff] %v732_v39  ;;  %858 = vst [vmem:[#allocation2 + $0xe0] sm:$0xff] %v812_v40  ;;  %v747_v43 = vadd.f32 %v2137_v41, %v3320_v48  ;;  %v827_v44 = vadd.f32 %v2161_v42, %v3320_v48 }
 0x1c6   : > { %v741_v45 = vpop.f32.mrf.mxu0  ;;  %v821_v46 = vpop.f32.mrf.mxu1 }
 0x1c7   : > { %845 = vst [vmem:[#allocation2 + $0x78] sm:$0xff] %v747_v43  ;;  %861 = vst [vmem:[#allocation2 + $0xf8] sm:$0xff] %v827_v44  ;;  %v742_v47 = vadd.f32 %v3320_v48, %v741_v45  ;;  %v822_v49 = vadd.f32 %v3320_v48, %v821_v46 }
 0x1c9   : > { %844 = vst [vmem:[#allocation2 + $0x70] sm:$0xff] %v742_v47  ;;  %860 = vst [vmem:[#allocation2 + $0xf0] sm:$0xff] %v822_v49 }
 0x1ca PF: > { %s3616_s9 = sld [smem:[#allocation25_spill]] }
 0x1d0   : > { %p1886_p5 = scmp.ne.s32.totalorder %s3616_s9, 0 }
 0x1d2   : > { %864 = sbr.rel (%p1886_p5) target bundleno = 480 (0x1e0), region = 100 }
 0x1d7   : > { %v2958_v50 = vmov 0.0  }
 0x1d8   : > { %865 = vst [vmem:[#allocation3 + $0x30] sm:$0xff] %v2958_v50  ;;  %866 = vst [vmem:[#allocation3] sm:$0xff] %v2958_v50 }
 0x1d9   : > { %867 = vst [vmem:[#allocation3 + $0x58] sm:$0xff] %v2958_v50  ;;  %868 = vst [vmem:[#allocation3 + $0x18] sm:$0xff] %v2958_v50 }
 0x1da   : > { %869 = vst [vmem:[#allocation3 + $0x50] sm:$0xff] %v2958_v50  ;;  %870 = vst [vmem:[#allocation3 + $0x68] sm:$0xff] %v2958_v50 }
 0x1db   : > { %871 = vst [vmem:[#allocation3 + $0x8] sm:$0xff] %v2958_v50  ;;  %872 = vst [vmem:[#allocation3 + $0x48] sm:$0xff] %v2958_v50 }
 0x1dc   : > { %873 = vst [vmem:[#allocation3 + $0x40] sm:$0xff] %v2958_v50  ;;  %874 = vst [vmem:[#allocation3 + $0x20] sm:$0xff] %v2958_v50 }
 0x1dd   : > { %875 = vst [vmem:[#allocation3 + $0x10] sm:$0xff] %v2958_v50  ;;  %876 = vst [vmem:[#allocation3 + $0x38] sm:$0xff] %v2958_v50 }
 0x1de   : > { %877 = vst [vmem:[#allocation3 + $0x60] sm:$0xff] %v2958_v50  ;;  %878 = vst [vmem:[#allocation3 + $0x70] sm:$0xff] %v2958_v50 }
 0x1df   : > { %879 = vst [vmem:[#allocation3 + $0x78] sm:$0xff] %v2958_v50  ;;  %880 = vst [vmem:[#allocation3 + $0x28] sm:$0xff] %v2958_v50 }
 0x1e0 PF: > { %s3617_s21 = sld [smem:[#allocation27_spill]]  ;;  %v2583_v48 = vld [vmem:[%s3277_s14] sm:$0xff]   ;;  %v2585_v12 = vld [vmem:[%s3277_s14 + $0x8] sm:$0xff]   ;;  %v2587_v14 = vld [vmem:[%s3277_s14 + $0x10] sm:$0xff]  }
 0x1e1   : > { %s3618_s15 = sld [smem:[#allocation25_spill]]  ;;  %v2584_v51 = vld [vmem:[%s3277_s14 + $0x20] sm:$0xff]   ;;  %2178 = vmatprep.mubr.bf16.mxu0 %v2583_v48  ;;  %v2586_v13 = vld [vmem:[%s3277_s14 + $0x28] sm:$0xff]   ;;  %v2588_v15 = vld [vmem:[%s3277_s14 + $0x30] sm:$0xff]  }
 0x1e2   : > { %2186 = vmatprep.mubr.bf16.mxu1 %v2584_v51  ;;  %v2589_v16 = vld [vmem:[%s3277_s14 + $0x18] sm:$0xff]   ;;  %v922_v22 = vld [vmem:[#allocation3 + $0x30] sm:$0xff]  ;;  %v923_v34 = vld [vmem:[#allocation3] sm:$0xff] }
 0x1e3   : > { %v2590_v17 = vld [vmem:[%s3277_s14 + $0x38] sm:$0xff]   ;;  %v930_v23 = vld [vmem:[#allocation3 + $0x40] sm:$0xff]  ;;  %v928_v40 = vld [vmem:[#allocation3 + $0x8] sm:$0xff] }
 0x1e4   : > { %v924_v18 = vld [vmem:[#allocation3 + $0x58] sm:$0xff]  ;;  %v932_v19 = vld [vmem:[#allocation3 + $0x10] sm:$0xff]  ;;  %v931_v35 = vld [vmem:[#allocation3 + $0x20] sm:$0xff] }
 0x1e5   : > { %v925_v28 = vld [vmem:[#allocation3 + $0x18] sm:$0xff]  ;;  %v926_v46 = vld [vmem:[#allocation3 + $0x50] sm:$0xff]  ;;  %v934_v47 = vld [vmem:[#allocation3 + $0x60] sm:$0xff] }
 0x1e6   : > { %p881_p13 = scmp.lt.s32.totalorder %s3617_s21, 0  ;;  %s882_s8 = ssub.s32 0, %s3617_s21  ;;  %v933_v29 = vld [vmem:[#allocation3 + $0x38] sm:$0xff] }
 0x1e7   : > { %s1887_s3 = smin.u32 %s3617_s21, %s882_s8  ;;  %s1890_s7 = sshll.u32 %s3618_s15, 7  ;;  %v936_v41 = vld [vmem:[#allocation3 + $0x78] sm:$0xff] }
 0x1e8   : > { %s884_s11 = sand.u32 1, %s1887_s3   ;;  %p1900_p7 = scmp.ne.s32.totalorder %s3618_s15, 1 }
 0x1e9   : > { %s885_s16 = ssub.s32 0, %s884_s11  ;;  %s3619_s14 = sld [smem:[#allocation27_spill]] (!%p1900_p7) }
 0x1ea   : > { %s3652_s16 = smov (!%p881_p13, %s885_s16), %s884_s11 }
 0x1eb   : > { %p1889_p8 = scmp.lt.s32.totalorder %s3652_s16, 0  ;;  %s891_s23 = sadd.s32 2, %s3652_s16 }
 0x1ed   : > { %s3654_s23 = smov (!%p1889_p8, %s891_s23), %s3652_s16 }
 0x1ee   : > { %s893_s4 = ssub.s32 1, %s3654_s23  ;;  %s1891_s12 = sshll.u32 %s3654_s23, 8 }
 0x1ef   : > { %s896_s30 = sadd.s32 %s1891_s12, %s1890_s7  ;;  %p1355_p2 = scmp.eq.s32.totalorder (!%p1900_p7), %s3619_s14, 3 }
 0x1f0   : > { %s3365_s2 = scalar_lea.vmem [#allocation2], %s896_s30  ;;  %s3415_s15 = sshll.u32 (!%p1900_p7), %s893_s4, 8 }
 0x1f1   : > { %v912_v52 = vld [vmem:[%s3365_s2 + $0x70] sm:$0xff]  ;;  %v913_v53 = vld [vmem:[%s3365_s2 + $0x78] sm:$0xff]  ;;  %v910_v54 = vld [vmem:[%s3365_s2 + $0x60] sm:$0xff] }
 0x1f2   : > { %v921_v55 = vpack.c.bf16 %v913_v53, %v912_v52  ;;  %v911_v56 = vld [vmem:[%s3365_s2 + $0x68] sm:$0xff]  ;;  %v908_v58 = vld [vmem:[%s3365_s2 + $0x50] sm:$0xff]  ;;  %v909_v59 = vld [vmem:[%s3365_s2 + $0x58] sm:$0xff] }
 0x1f3   : > { %v920_v57 = vpack.c.bf16 %v911_v56, %v910_v54  ;;  %v919_v60 = vpack.c.bf16 %v909_v59, %v908_v58  ;;  %v906_v61 = vld [vmem:[%s3365_s2 + $0x40] sm:$0xff]  ;;  %v907_v62 = vld [vmem:[%s3365_s2 + $0x48] sm:$0xff]  ;;  %v904_v0 = vld [vmem:[%s3365_s2 + $0x30] sm:$0xff] }
 0x1f4   : > { %2162 = vmatprep.subr.bf16.mxu0 %v921_v55  ;;  %2352 = vmatprep.subr.bf16.mxu1 %v921_v55  ;;  %v918_v63 = vpack.c.bf16 %v907_v62, %v906_v61  ;;  %v905_v1 = vld [vmem:[%s3365_s2 + $0x38] sm:$0xff]  ;;  %v902_v3 = vld [vmem:[%s3365_s2 + $0x20] sm:$0xff]  ;;  %v903_v4 = vld [vmem:[%s3365_s2 + $0x28] sm:$0xff] }
 0x1f5   : > { %2163 = vmatpush3.bf16.msra.mxu0 %v921_v55  ;;  %2360 = vmatpush3.bf16.msra.mxu1 %v921_v55  ;;  %v917_v2 = vpack.c.bf16 %v905_v1, %v904_v0  ;;  %v916_v5 = vpack.c.bf16 %v903_v4, %v902_v3  ;;  %v900_v6 = vld [vmem:[%s3365_s2 + $0x10] sm:$0xff]  ;;  %v901_v7 = vld [vmem:[%s3365_s2 + $0x18] sm:$0xff]  ;;  %v898_v9 = vld [vmem:[%s3365_s2] sm:$0xff] }
 0x1f6   : > { %2164 = vmatprep.subr.bf16.mxu0 %v920_v57  ;;  %2353 = vmatprep.subr.bf16.mxu1 %v920_v57  ;;  %v915_v8 = vpack.c.bf16 %v901_v7, %v900_v6  ;;  %v899_v10 = vld [vmem:[%s3365_s2 + $0x8] sm:$0xff]  ;;  %v935_v59 = vld [vmem:[#allocation3 + $0x70] sm:$0xff] }
 0x1f7   : > { %v914_v11 = vpack.c.bf16 %v899_v10, %v898_v9  ;;  %v929_v52 = vld [vmem:[#allocation3 + $0x48] sm:$0xff] }
 0x1f8   : > { %v937_v53 = vld [vmem:[#allocation3 + $0x28] sm:$0xff] }
 0x1f9   : > { %2165 = vmatpush3.bf16.msra.mxu0 %v920_v57  ;;  %2361 = vmatpush3.bf16.msra.mxu1 %v920_v57  ;;  %v927_v58 = vld [vmem:[#allocation3 + $0x68] sm:$0xff] }
 0x1fa   : > { %2166 = vmatprep.subr.bf16.mxu0 %v919_v60  ;;  %2354 = vmatprep.subr.bf16.mxu1 %v919_v60 }
 0x1fd   : > { %2167 = vmatpush3.bf16.msra.mxu0 %v919_v60  ;;  %2362 = vmatpush3.bf16.msra.mxu1 %v919_v60 }
 0x1fe   : > { %2168 = vmatprep.subr.bf16.mxu0 %v918_v63  ;;  %2355 = vmatprep.subr.bf16.mxu1 %v918_v63 }
 0x201   : > { %2169 = vmatpush3.bf16.msra.mxu0 %v918_v63  ;;  %2363 = vmatpush3.bf16.msra.mxu1 %v918_v63 }
 0x202   : > { %2170 = vmatprep.subr.bf16.mxu0 %v917_v2  ;;  %2356 = vmatprep.subr.bf16.mxu1 %v917_v2 }
 0x205   : > { %2171 = vmatpush3.bf16.msra.mxu0 %v917_v2  ;;  %2364 = vmatpush3.bf16.msra.mxu1 %v917_v2 }
 0x206   : > { %2172 = vmatprep.subr.bf16.mxu0 %v916_v5  ;;  %2357 = vmatprep.subr.bf16.mxu1 %v916_v5 }
 0x209   : > { %2173 = vmatpush3.bf16.msra.mxu0 %v916_v5  ;;  %2365 = vmatpush3.bf16.msra.mxu1 %v916_v5 }
 0x20a   : > { %2174 = vmatprep.subr.bf16.mxu0 %v915_v8  ;;  %2358 = vmatprep.subr.bf16.mxu1 %v915_v8 }
 0x20d   : > { %2175 = vmatpush3.bf16.msra.mxu0 %v915_v8  ;;  %2366 = vmatpush3.bf16.msra.mxu1 %v915_v8 }
 0x20e   : > { %2176 = vmatprep.subr.bf16.mxu0 %v914_v11  ;;  %2359 = vmatprep.subr.bf16.mxu1 %v914_v11 }
 0x211   : > { %2177 = vmatpush3.bf16.msra.mxu0 %v914_v11  ;;  %2367 = vmatpush3.bf16.msra.mxu1 %v914_v11 }
 0x214   : > { %2179 = vmatmul.mubr.bf16.vlgmr.msra.gmra.mxu0 %v2585_v12  ;;  %2187 = vmatmul.mubr.bf16.vlgmr.msra.gmra.mxu1 %v2586_v13 }
 0x215   : > { %2182 = vmatprep.mubr.bf16.mxu0 %v2587_v14  ;;  %2190 = vmatprep.mubr.bf16.mxu1 %v2588_v15 }
 0x21c   : > { %2183 = vmatmul.mubr.bf16.gmra.mxu0 %v2589_v16  ;;  %2191 = vmatmul.mubr.bf16.gmra.mxu1 %v2590_v17 }
 0x2d4   : > { %v2180_v20 = vpop.f32.mrf.mxu0  ;;  %v2188_v21 = vpop.f32.mrf.mxu1 }
 0x2d5   : > { %v1101_v24 = vadd.f32 %v2180_v20, %v924_v18  ;;  %v1109_v25 = vadd.f32 %v2188_v21, %v932_v19 }
 0x2d6   : > { %v1036_v26 = vpop.f32.mrf.mxu0  ;;  %v1068_v27 = vpop.f32.mrf.mxu1 }
 0x2d7   : > { %1117 = vst [vmem:[#allocation3 + $0x58] sm:$0xff] %v1101_v24  ;;  %1125 = vst [vmem:[#allocation3 + $0x10] sm:$0xff] %v1109_v25  ;;  %v1099_v30 = vadd.f32 %v1036_v26, %v922_v22  ;;  %v1107_v31 = vadd.f32 %v1068_v27, %v930_v23 }
 0x2d8   : > { %v2181_v32 = vpop.f32.mrf.mxu0  ;;  %v2189_v33 = vpop.f32.mrf.mxu1 }
 0x2d9   : > { %1115 = vst [vmem:[#allocation3 + $0x30] sm:$0xff] %v1099_v30  ;;  %1123 = vst [vmem:[#allocation3 + $0x40] sm:$0xff] %v1107_v31  ;;  %v1102_v36 = vadd.f32 %v2181_v32, %v925_v28  ;;  %v1110_v37 = vadd.f32 %v2189_v33, %v933_v29 }
 0x2da   : > { %v1039_v38 = vpop.f32.mrf.mxu0  ;;  %v1071_v39 = vpop.f32.mrf.mxu1 }
 0x2db   : > { %1118 = vst [vmem:[#allocation3 + $0x18] sm:$0xff] %v1102_v36  ;;  %1126 = vst [vmem:[#allocation3 + $0x38] sm:$0xff] %v1110_v37  ;;  %v1100_v42 = vadd.f32 %v1039_v38, %v923_v34  ;;  %v1108_v43 = vadd.f32 %v1071_v39, %v931_v35 }
 0x2dc   : > { %v2184_v44 = vpop.f32.mrf.mxu0  ;;  %v2192_v45 = vpop.f32.mrf.mxu1 }
 0x2dd   : > { %1116 = vst [vmem:[#allocation3] sm:$0xff] %v1100_v42  ;;  %1124 = vst [vmem:[#allocation3 + $0x20] sm:$0xff] %v1108_v43  ;;  %v1105_v49 = vadd.f32 %v2184_v44, %v928_v40  ;;  %v1113_v50 = vadd.f32 %v2192_v45, %v936_v41 }
 0x2de   : > { %v1052_v48 = vpop.f32.mrf.mxu0  ;;  %v1084_v51 = vpop.f32.mrf.mxu1 }
 0x2df   : > { %1121 = vst [vmem:[#allocation3 + $0x8] sm:$0xff] %v1105_v49  ;;  %1129 = vst [vmem:[#allocation3 + $0x78] sm:$0xff] %v1113_v50  ;;  %v1103_v54 = vadd.f32 %v1052_v48, %v926_v46  ;;  %v1111_v55 = vadd.f32 %v1084_v51, %v934_v47 }
 0x2e0   : > { %v2185_v56 = vpop.f32.mrf.mxu0  ;;  %v2193_v57 = vpop.f32.mrf.mxu1 }
 0x2e1   : > { %1119 = vst [vmem:[#allocation3 + $0x50] sm:$0xff] %v1103_v54  ;;  %1127 = vst [vmem:[#allocation3 + $0x60] sm:$0xff] %v1111_v55  ;;  %v1106_v60 = vadd.f32 %v2185_v56, %v929_v52  ;;  %v1114_v61 = vadd.f32 %v2193_v57, %v937_v53  ;;  %1134 = sbr.rel (%p1900_p7) target bundleno = 1944 (0x798), region = 104 }
 0x2e2   : > { %v1055_v62 = vpop.f32.mrf.mxu0  ;;  %v1087_v63 = vpop.f32.mrf.mxu1 }
 0x2e3   : > { %1122 = vst [vmem:[#allocation3 + $0x48] sm:$0xff] %v1106_v60  ;;  %1130 = vst [vmem:[#allocation3 + $0x28] sm:$0xff] %v1114_v61  ;;  %v1104_v0 = vadd.f32 %v1055_v62, %v927_v58  ;;  %v1112_v1 = vadd.f32 %v1087_v63, %v935_v59 }
 0x2e5   : > { %1120 = vst [vmem:[#allocation3 + $0x68] sm:$0xff] %v1104_v0  ;;  %1128 = vst [vmem:[#allocation3 + $0x70] sm:$0xff] %v1112_v1 }
 0x2e6   : > { %v1167_v2 = vld [vmem:[%s3292_s25 + $0x78] sm:$0xff]  ;;  %v1166_v3 = vld [vmem:[%s3292_s25 + $0x70] sm:$0xff]  ;;  %v1165_v4 = vld [vmem:[%s3292_s25 + $0x68] sm:$0xff] }
 0x2e7   : > { %2194 = vmatprep.subr.mxu0 %v1167_v2  ;;  %2368 = vmatprep.subr.mxu1 %v1167_v2  ;;  %v1164_v5 = vld [vmem:[%s3292_s25 + $0x60] sm:$0xff]  ;;  %v1163_v6 = vld [vmem:[%s3292_s25 + $0x58] sm:$0xff]  ;;  %v1162_v7 = vld [vmem:[%s3292_s25 + $0x50] sm:$0xff] }
 0x2e8   : > { %2195 = vmatpush3.msra.mxu0 %v1167_v2  ;;  %2384 = vmatpush3.msra.mxu1 %v1167_v2  ;;  %v1161_v8 = vld [vmem:[%s3292_s25 + $0x48] sm:$0xff]  ;;  %v1160_v9 = vld [vmem:[%s3292_s25 + $0x40] sm:$0xff]  ;;  %v1159_v10 = vld [vmem:[%s3292_s25 + $0x38] sm:$0xff] }
 0x2e9   : > { %2196 = vmatprep.subr.mxu0 %v1166_v3  ;;  %2369 = vmatprep.subr.mxu1 %v1166_v3  ;;  %v1158_v11 = vld [vmem:[%s3292_s25 + $0x30] sm:$0xff]  ;;  %v1157_v12 = vld [vmem:[%s3292_s25 + $0x28] sm:$0xff]  ;;  %v1156_v13 = vld [vmem:[%s3292_s25 + $0x20] sm:$0xff] }
 0x2ea   : > { %2197 = vmatpush3.msra.mxu0 %v1166_v3  ;;  %2385 = vmatpush3.msra.mxu1 %v1166_v3  ;;  %v1155_v14 = vld [vmem:[%s3292_s25 + $0x18] sm:$0xff]  ;;  %v1154_v15 = vld [vmem:[%s3292_s25 + $0x10] sm:$0xff]  ;;  %v1153_v16 = vld [vmem:[%s3292_s25 + $0x8] sm:$0xff] }
 0x2eb   : > { %2198 = vmatprep.subr.mxu0 %v1165_v4  ;;  %2370 = vmatprep.subr.mxu1 %v1165_v4  ;;  %v1152_v17 = vld [vmem:[%s3292_s25] sm:$0xff]  ;;  %v1136_v18 = vld [vmem:[#allocation3 + $0x30] sm:$0xff]  ;;  %v1138_v22 = vld [vmem:[#allocation3 + $0x58] sm:$0xff]  ;;  %s3620_s25 = sld [smem:[#allocation26_spill]] }
 0x2ec   : > { %2199 = vmatpush3.msra.mxu0 %v1165_v4  ;;  %2386 = vmatpush3.msra.mxu1 %v1165_v4  ;;  %v1144_v19 = vld [vmem:[#allocation3 + $0x40] sm:$0xff]  ;;  %v1146_v23 = vld [vmem:[#allocation3 + $0x10] sm:$0xff]  ;;  %v1139_v24 = vld [vmem:[#allocation3 + $0x18] sm:$0xff] }
 0x2ed   : > { %2200 = vmatprep.subr.mxu0 %v1164_v5  ;;  %2371 = vmatprep.subr.mxu1 %v1164_v5  ;;  %v1137_v20 = vld [vmem:[#allocation3] sm:$0xff]  ;;  %v1147_v25 = vld [vmem:[#allocation3 + $0x38] sm:$0xff]  ;;  %v1140_v26 = vld [vmem:[#allocation3 + $0x50] sm:$0xff] }
 0x2ee   : > { %2201 = vmatpush3.msra.mxu0 %v1164_v5  ;;  %2387 = vmatpush3.msra.mxu1 %v1164_v5  ;;  %v1145_v21 = vld [vmem:[#allocation3 + $0x20] sm:$0xff]  ;;  %v1141_v28 = vld [vmem:[#allocation3 + $0x68] sm:$0xff]  ;;  %v1149_v29 = vld [vmem:[#allocation3 + $0x70] sm:$0xff] }
 0x2ef   : > { %2202 = vmatprep.subr.mxu0 %v1163_v6  ;;  %2372 = vmatprep.subr.mxu1 %v1163_v6  ;;  %v1148_v27 = vld [vmem:[#allocation3 + $0x60] sm:$0xff]  ;;  %v1142_v30 = vld [vmem:[#allocation3 + $0x8] sm:$0xff]  ;;  %v1150_v31 = vld [vmem:[#allocation3 + $0x78] sm:$0xff] }
 0x2f0   : > { %2203 = vmatpush3.msra.mxu0 %v1163_v6  ;;  %2388 = vmatpush3.msra.mxu1 %v1163_v6  ;;  %v1143_v32 = vld [vmem:[#allocation3 + $0x48] sm:$0xff]  ;;  %v1902_v34 = vld [vmem:[%s539_s17] ss:$0 sm:$0xff] }
 0x2f1   : > { %2204 = vmatprep.subr.mxu0 %v1162_v7  ;;  %2373 = vmatprep.subr.mxu1 %v1162_v7  ;;  %v1151_v33 = vld [vmem:[#allocation3 + $0x28] sm:$0xff]  ;;  %p1356_p1 = scmp.eq.s32.totalorder %s3620_s25, 1  ;;  %s1901_s21 = sshll.u32 %s3620_s25, 7 }
 0x2f2   : > { %2205 = vmatpush3.msra.mxu0 %v1162_v7  ;;  %2389 = vmatpush3.msra.mxu1 %v1162_v7  ;;  %s1337_s16 = sadd.s32 %s3415_s15, %s1901_s21 }
 0x2f3   : > { %2206 = vmatprep.subr.mxu0 %v1161_v8  ;;  %2374 = vmatprep.subr.mxu1 %v1161_v8  ;;  %p3408_p10 = pnand %p1356_p1, %p1355_p2  ;;  %s3423_s7 = scalar_lea.vmem [#allocation2], %s1337_s16 }
 0x2f4   : > { %2207 = vmatpush3.msra.mxu0 %v1161_v8  ;;  %2390 = vmatpush3.msra.mxu1 %v1161_v8  ;;  %s3444_s24 = scalar_lea.vmem (!%p3408_p10), [#allocation2], %s3415_s15  ;;  %s3623_s4 = sld [smem:[#allocation36_spill]] (!%p3408_p10) }
 0x2f5   : > { %2208 = vmatprep.subr.mxu0 %v1160_v9  ;;  %2375 = vmatprep.subr.mxu1 %v1160_v9  ;;  %s3624_s2 = sld [smem:[#allocation38_spill]] (!%p3408_p10) }
 0x2f6   : > { %2209 = vmatpush3.msra.mxu0 %v1160_v9  ;;  %2391 = vmatpush3.msra.mxu1 %v1160_v9 }
 0x2f7   : > { %2210 = vmatprep.subr.mxu0 %v1159_v10  ;;  %2376 = vmatprep.subr.mxu1 %v1159_v10 }
 0x2f8   : > { %2211 = vmatpush3.msra.mxu0 %v1159_v10  ;;  %2392 = vmatpush3.msra.mxu1 %v1159_v10 }
 0x2f9   : > { %2212 = vmatprep.subr.mxu0 %v1158_v11  ;;  %2377 = vmatprep.subr.mxu1 %v1158_v11 }
 0x2fa   : > { %2213 = vmatpush3.msra.mxu0 %v1158_v11  ;;  %2393 = vmatpush3.msra.mxu1 %v1158_v11 }
 0x2fb   : > { %2214 = vmatprep.subr.mxu0 %v1157_v12  ;;  %2378 = vmatprep.subr.mxu1 %v1157_v12 }
 0x2fc   : > { %2215 = vmatpush3.msra.mxu0 %v1157_v12  ;;  %2394 = vmatpush3.msra.mxu1 %v1157_v12 }
 0x2fd   : > { %2216 = vmatprep.subr.mxu0 %v1156_v13  ;;  %2379 = vmatprep.subr.mxu1 %v1156_v13 }
 0x2fe   : > { %2217 = vmatpush3.msra.mxu0 %v1156_v13  ;;  %2395 = vmatpush3.msra.mxu1 %v1156_v13 }
 0x2ff   : > { %2218 = vmatprep.subr.mxu0 %v1155_v14  ;;  %2380 = vmatprep.subr.mxu1 %v1155_v14 }
 0x300   : > { %2219 = vmatpush3.msra.mxu0 %v1155_v14  ;;  %2396 = vmatpush3.msra.mxu1 %v1155_v14 }
 0x301   : > { %2220 = vmatprep.subr.mxu0 %v1154_v15  ;;  %2381 = vmatprep.subr.mxu1 %v1154_v15 }
 0x302   : > { %2221 = vmatpush3.msra.mxu0 %v1154_v15  ;;  %2397 = vmatpush3.msra.mxu1 %v1154_v15 }
 0x303   : > { %2222 = vmatprep.subr.mxu0 %v1153_v16  ;;  %2382 = vmatprep.subr.mxu1 %v1153_v16 }
 0x304   : > { %2223 = vmatpush3.msra.mxu0 %v1153_v16  ;;  %2398 = vmatpush3.msra.mxu1 %v1153_v16 }
 0x305   : > { %2224 = vmatprep.subr.mxu0 %v1152_v17  ;;  %2383 = vmatprep.subr.mxu1 %v1152_v17 }
 0x306   : > { %2225 = vmatpush3.msra.mxu0 %v1152_v17  ;;  %2399 = vmatpush3.msra.mxu1 %v1152_v17 }
 0x307   : > { %2226 = vmatprep.mubr.f32.mxu0 %v1136_v18  ;;  %2238 = vmatprep.mubr.f32.mxu1 %v1144_v19 }
 0x308   : > { %2227 = vmatmul.mubr.f32.vlgmr.msra.gmra.mxu0 %v1137_v20  ;;  %2239 = vmatmul.mubr.f32.vlgmr.msra.gmra.mxu1 %v1145_v21 }
 0x309   : > { %2229 = vmatprep.mubr.f32.mxu0 %v1138_v22  ;;  %2241 = vmatprep.mubr.f32.mxu1 %v1146_v23 }
 0x30c   : > { %2230 = vmatmul.mubr.f32.gmra.mxu0 %v1139_v24  ;;  %2242 = vmatmul.mubr.f32.gmra.mxu1 %v1147_v25 }
 0x30d   : > { %2232 = vmatprep.mubr.f32.mxu0 %v1140_v26  ;;  %2244 = vmatprep.mubr.f32.mxu1 %v1148_v27 }
 0x310   : > { %2233 = vmatmul.mubr.f32.gmra.mxu0 %v1141_v28  ;;  %2245 = vmatmul.mubr.f32.gmra.mxu1 %v1149_v29 }
 0x311   : > { %2235 = vmatprep.mubr.f32.mxu0 %v1142_v30  ;;  %2247 = vmatprep.mubr.f32.mxu1 %v1150_v31 }
 0x314   : > { %2236 = vmatmul.mubr.f32.gmra.mxu0 %v1143_v32  ;;  %2248 = vmatmul.mubr.f32.gmra.mxu1 %v1151_v33 }
 0x3c8   : > { %v2228_v35 = vpop.f32.mrf.mxu0  ;;  %v2240_v36 = vpop.f32.mrf.mxu1 }
 0x3c9   : > { %v1247_v37 = vadd.f32 %v2228_v35, %v1902_v34  ;;  %v1287_v38 = vadd.f32 %v2240_v36, %v1902_v34 }
 0x3ca   : > { %v1241_v39 = vpop.f32.mrf.mxu0  ;;  %v1281_v40 = vpop.f32.mrf.mxu1 }
 0x3cb   : > { %v1321_v41 = vmax.f32 %v1247_v37, 0.0  ;;  %v1329_v42 = vmax.f32 %v1287_v38, 0.0  ;;  %v1242_v43 = vadd.f32 %v1902_v34, %v1241_v39  ;;  %v1282_v44 = vadd.f32 %v1902_v34, %v1281_v40 }
 0x3cc   : > { %v2231_v45 = vpop.f32.mrf.mxu0  ;;  %v2243_v46 = vpop.f32.mrf.mxu1 }
 0x3cd   : > { %1340 = vst [vmem:[%s3423_s7 + $0x8] sm:$0xff] %v1321_v41  ;;  %1348 = vst [vmem:[%s3423_s7 + $0x48] sm:$0xff] %v1329_v42  ;;  %v1320_v47 = vmax.f32 %v1242_v43, 0.0  ;;  %v1328_v49 = vmax.f32 %v1282_v44, 0.0  ;;  %v1257_v50 = vadd.f32 %v2231_v45, %v1902_v34  ;;  %v1297_v48 = vadd.f32 %v2243_v46, %v1902_v34 }
 0x3ce   : > { %v1251_v51 = vpop.f32.mrf.mxu0  ;;  %v1291_v52 = vpop.f32.mrf.mxu1 }
 0x3cf   : > { %1339 = vst [vmem:[%s3423_s7] sm:$0xff] %v1320_v47  ;;  %1347 = vst [vmem:[%s3423_s7 + $0x40] sm:$0xff] %v1328_v49  ;;  %v1323_v53 = vmax.f32 %v1257_v50, 0.0  ;;  %v1331_v54 = vmax.f32 %v1297_v48, 0.0  ;;  %v1252_v55 = vadd.f32 %v1902_v34, %v1251_v51  ;;  %v1292_v56 = vadd.f32 %v1902_v34, %v1291_v52 }
 0x3d0   : > { %v2234_v57 = vpop.f32.mrf.mxu0  ;;  %v2246_v58 = vpop.f32.mrf.mxu1 }
 0x3d1   : > { %1342 = vst [vmem:[%s3423_s7 + $0x18] sm:$0xff] %v1323_v53  ;;  %1350 = vst [vmem:[%s3423_s7 + $0x58] sm:$0xff] %v1331_v54  ;;  %v1322_v59 = vmax.f32 %v1252_v55, 0.0  ;;  %v1330_v60 = vmax.f32 %v1292_v56, 0.0  ;;  %v1267_v61 = vadd.f32 %v2234_v57, %v1902_v34  ;;  %v1307_v62 = vadd.f32 %v2246_v58, %v1902_v34 }
 0x3d2   : > { %v1261_v63 = vpop.f32.mrf.mxu0  ;;  %v1301_v0 = vpop.f32.mrf.mxu1 }
 0x3d3   : > { %1341 = vst [vmem:[%s3423_s7 + $0x10] sm:$0xff] %v1322_v59  ;;  %1349 = vst [vmem:[%s3423_s7 + $0x50] sm:$0xff] %v1330_v60  ;;  %v1325_v1 = vmax.f32 %v1267_v61, 0.0  ;;  %v1333_v2 = vmax.f32 %v1307_v62, 0.0  ;;  %v1262_v3 = vadd.f32 %v1902_v34, %v1261_v63  ;;  %v1302_v4 = vadd.f32 %v1902_v34, %v1301_v0 }
 0x3d4   : > { %v2237_v5 = vpop.f32.mrf.mxu0  ;;  %v2249_v6 = vpop.f32.mrf.mxu1 }
 0x3d5   : > { %1344 = vst [vmem:[%s3423_s7 + $0x28] sm:$0xff] %v1325_v1  ;;  %1352 = vst [vmem:[%s3423_s7 + $0x68] sm:$0xff] %v1333_v2  ;;  %v1324_v7 = vmax.f32 %v1262_v3, 0.0  ;;  %v1332_v8 = vmax.f32 %v1302_v4, 0.0  ;;  %v1277_v9 = vadd.f32 %v2237_v5, %v1902_v34  ;;  %v1317_v10 = vadd.f32 %v2249_v6, %v1902_v34 }
 0x3d6   : > { %v1271_v11 = vpop.f32.mrf.mxu0  ;;  %v1311_v12 = vpop.f32.mrf.mxu1 }
 0x3d7   : > { %1343 = vst [vmem:[%s3423_s7 + $0x20] sm:$0xff] %v1324_v7  ;;  %1351 = vst [vmem:[%s3423_s7 + $0x60] sm:$0xff] %v1332_v8  ;;  %v1327_v13 = vmax.f32 %v1277_v9, 0.0  ;;  %v1335_v14 = vmax.f32 %v1317_v10, 0.0  ;;  %v1272_v15 = vadd.f32 %v1902_v34, %v1271_v11  ;;  %v1312_v16 = vadd.f32 %v1902_v34, %v1311_v12  ;;  %1360 = sbr.rel (%p3408_p10) target bundleno = 1944 (0x798), region = 108 }
 0x3d9   : > { %1346 = vst [vmem:[%s3423_s7 + $0x38] sm:$0xff] %v1327_v13  ;;  %1354 = vst [vmem:[%s3423_s7 + $0x78] sm:$0xff] %v1335_v14  ;;  %v1326_v17 = vmax.f32 %v1272_v15, 0.0  ;;  %v1334_v18 = vmax.f32 %v1312_v16, 0.0 }
 0x3db   : > { %1345 = vst [vmem:[%s3423_s7 + $0x30] sm:$0xff] %v1326_v17  ;;  %1353 = vst [vmem:[%s3423_s7 + $0x70] sm:$0xff] %v1334_v18 }
 0x3dc   : > { %v1395_v19 = vld [vmem:[#allocation9 + $0x8] sm:$0xff]  ;;  %v1488_v34 = vld [vmem:[#allocation13 + $0x78] sm:$0xff]  ;;  %v1487_v35 = vld [vmem:[#allocation13 + $0x70] sm:$0xff] }
 0x3dd   : > { %1462 = vmatprep.mubr.f32.mxu0 %v1395_v19  ;;  %2250 = vmatprep.subr.mxu1 %v1488_v34  ;;  %v1486_v38 = vld [vmem:[#allocation13 + $0x68] sm:$0xff]  ;;  %v1485_v41 = vld [vmem:[#allocation13 + $0x60] sm:$0xff]  ;;  %v1484_v44 = vld [vmem:[#allocation13 + $0x58] sm:$0xff] }
 0x3de   : > { %2251 = vmatpush3.msra.mxu1 %v1488_v34  ;;  %v1483_v47 = vld [vmem:[#allocation13 + $0x50] sm:$0xff]  ;;  %v1482_v48 = vld [vmem:[#allocation13 + $0x48] sm:$0xff]  ;;  %v1481_v53 = vld [vmem:[#allocation13 + $0x40] sm:$0xff] }
 0x3df   : > { %2252 = vmatprep.subr.mxu1 %v1487_v35  ;;  %v1480_v56 = vld [vmem:[#allocation13 + $0x38] sm:$0xff]  ;;  %v1479_v59 = vld [vmem:[#allocation13 + $0x30] sm:$0xff]  ;;  %v1478_v62 = vld [vmem:[#allocation13 + $0x28] sm:$0xff] }
 0x3e0   : > { %2253 = vmatpush3.msra.mxu1 %v1487_v35  ;;  %v1394_v63 = vld [vmem:[#allocation9] sm:$0xff]  ;;  %v1397_v0 = vld [vmem:[#allocation9 + $0x18] sm:$0xff]  ;;  %v1396_v2 = vld [vmem:[#allocation9 + $0x10] sm:$0xff] }
 0x3e1   : > { %2254 = vmatprep.subr.mxu1 %v1486_v38  ;;  %v1477_v1 = vld [vmem:[#allocation13 + $0x20] sm:$0xff]  ;;  %v1476_v3 = vld [vmem:[#allocation13 + $0x18] sm:$0xff]  ;;  %v1475_v4 = vld [vmem:[#allocation13 + $0x10] sm:$0xff] }
 0x3e2   : > { %v1393_v20 = vld [vmem:[%s3444_s24 + $0xf8] sm:$0xff]  ;;  %v1392_v22 = vld [vmem:[%s3444_s24 + $0xf0] sm:$0xff]  ;;  %v1391_v24 = vld [vmem:[%s3444_s24 + $0xe8] sm:$0xff]  ;;  %2255 = vmatpush3.msra.mxu1 %v1486_v38 }
 0x3e3   : > { %v1377_v21 = vld [vmem:[%s3444_s24 + $0x78] sm:$0xff]  ;;  %2008 = vmatprep.subr.mxu0 %v1393_v20  ;;  %v1376_v23 = vld [vmem:[%s3444_s24 + $0x70] sm:$0xff]  ;;  %v1375_v25 = vld [vmem:[%s3444_s24 + $0x68] sm:$0xff]  ;;  %2256 = vmatprep.subr.mxu1 %v1485_v41 }
 0x3e4   : > { %2009 = vmatpush3.msra.mxu0 %v1377_v21  ;;  %v1390_v26 = vld [vmem:[%s3444_s24 + $0xe0] sm:$0xff]  ;;  %v1389_v28 = vld [vmem:[%s3444_s24 + $0xd8] sm:$0xff]  ;;  %v1388_v30 = vld [vmem:[%s3444_s24 + $0xd0] sm:$0xff]  ;;  %2257 = vmatpush3.msra.mxu1 %v1485_v41 }
 0x3e5   : > { %2010 = vmatprep.subr.mxu0 %v1392_v22  ;;  %v1374_v27 = vld [vmem:[%s3444_s24 + $0x60] sm:$0xff]  ;;  %v1373_v29 = vld [vmem:[%s3444_s24 + $0x58] sm:$0xff]  ;;  %v1372_v31 = vld [vmem:[%s3444_s24 + $0x50] sm:$0xff]  ;;  %2258 = vmatprep.subr.mxu1 %v1484_v44 }
 0x3e6   : > { %2011 = vmatpush3.msra.mxu0 %v1376_v23  ;;  %v1387_v32 = vld [vmem:[%s3444_s24 + $0xc8] sm:$0xff]  ;;  %v1386_v36 = vld [vmem:[%s3444_s24 + $0xc0] sm:$0xff]  ;;  %v1385_v39 = vld [vmem:[%s3444_s24 + $0xb8] sm:$0xff]  ;;  %2259 = vmatpush3.msra.mxu1 %v1484_v44 }
 0x3e7   : > { %2012 = vmatprep.subr.mxu0 %v1391_v24  ;;  %v1371_v33 = vld [vmem:[%s3444_s24 + $0x48] sm:$0xff]  ;;  %v1370_v37 = vld [vmem:[%s3444_s24 + $0x40] sm:$0xff]  ;;  %v1369_v40 = vld [vmem:[%s3444_s24 + $0x38] sm:$0xff]  ;;  %2260 = vmatprep.subr.mxu1 %v1483_v47 }
 0x3e8   : > { %2013 = vmatpush3.msra.mxu0 %v1375_v25  ;;  %v1384_v42 = vld [vmem:[%s3444_s24 + $0xb0] sm:$0xff]  ;;  %v1383_v45 = vld [vmem:[%s3444_s24 + $0xa8] sm:$0xff]  ;;  %v1382_v49 = vld [vmem:[%s3444_s24 + $0xa0] sm:$0xff]  ;;  %2261 = vmatpush3.msra.mxu1 %v1483_v47 }
 0x3e9   : > { %2014 = vmatprep.subr.mxu0 %v1390_v26  ;;  %v1368_v43 = vld [vmem:[%s3444_s24 + $0x30] sm:$0xff]  ;;  %v1367_v46 = vld [vmem:[%s3444_s24 + $0x28] sm:$0xff]  ;;  %v1366_v50 = vld [vmem:[%s3444_s24 + $0x20] sm:$0xff]  ;;  %2262 = vmatprep.subr.mxu1 %v1482_v48 }
 0x3ea   : > { %2015 = vmatpush3.msra.mxu0 %v1374_v27  ;;  %v1381_v51 = vld [vmem:[%s3444_s24 + $0x98] sm:$0xff]  ;;  %v1380_v54 = vld [vmem:[%s3444_s24 + $0x90] sm:$0xff]  ;;  %2263 = vmatpush3.msra.mxu1 %v1482_v48  ;;  %v1379_v57 = vld [vmem:[%s3444_s24 + $0x88] sm:$0xff] }
 0x3eb   : > { %2016 = vmatprep.subr.mxu0 %v1389_v28  ;;  %v1365_v52 = vld [vmem:[%s3444_s24 + $0x18] sm:$0xff]  ;;  %v1364_v55 = vld [vmem:[%s3444_s24 + $0x10] sm:$0xff]  ;;  %2264 = vmatprep.subr.mxu1 %v1481_v53  ;;  %v1363_v58 = vld [vmem:[%s3444_s24 + $0x8] sm:$0xff] }
 0x3ec   : > { %2017 = vmatpush3.msra.mxu0 %v1373_v29  ;;  %2265 = vmatpush3.msra.mxu1 %v1481_v53  ;;  %v1378_v60 = vld [vmem:[%s3444_s24 + $0x80] sm:$0xff]  ;;  %v1474_v5 = vld [vmem:[#allocation13 + $0x8] sm:$0xff]  ;;  %v1588_v7 = vld [vmem:[#allocation14 + $0x78] sm:$0xff] }
 0x3ed   : > { %2018 = vmatprep.subr.mxu0 %v1388_v30  ;;  %2266 = vmatprep.subr.mxu1 %v1480_v56  ;;  %v1362_v61 = vld [vmem:[%s3444_s24] sm:$0xff]  ;;  %v1587_v8 = vld [vmem:[#allocation14 + $0x70] sm:$0xff]  ;;  %v1586_v9 = vld [vmem:[#allocation14 + $0x68] sm:$0xff] }
 0x3ee   : > { %2019 = vmatpush3.msra.mxu0 %v1372_v31  ;;  %2267 = vmatpush3.msra.mxu1 %v1480_v56  ;;  %v1473_v6 = vld [vmem:[#allocation13] sm:$0xff]  ;;  %v1584_v11 = vld [vmem:[#allocation14 + $0x58] sm:$0xff]  ;;  %v1583_v12 = vld [vmem:[#allocation14 + $0x50] sm:$0xff] }
 0x3ef   : > { %2020 = vmatprep.subr.mxu0 %v1387_v32  ;;  %2268 = vmatprep.subr.mxu1 %v1479_v59  ;;  %v1585_v10 = vld [vmem:[#allocation14 + $0x60] sm:$0xff]  ;;  %v1582_v13 = vld [vmem:[#allocation14 + $0x48] sm:$0xff]  ;;  %v1580_v15 = vld [vmem:[#allocation14 + $0x38] sm:$0xff] }
 0x3f0   : > { %2021 = vmatpush3.msra.mxu0 %v1371_v33  ;;  %2269 = vmatpush3.msra.mxu1 %v1479_v59  ;;  %v1581_v14 = vld [vmem:[#allocation14 + $0x40] sm:$0xff]  ;;  %v1579_v16 = vld [vmem:[#allocation14 + $0x30] sm:$0xff]  ;;  %v1578_v17 = vld [vmem:[#allocation14 + $0x28] sm:$0xff] }
 0x3f1   : > { %2022 = vmatprep.subr.mxu0 %v1386_v36  ;;  %2270 = vmatprep.subr.mxu1 %v1478_v62  ;;  %v1577_v18 = vld [vmem:[#allocation14 + $0x20] sm:$0xff]  ;;  %v1576_v25 = vld [vmem:[#allocation14 + $0x18] sm:$0xff]  ;;  %v1575_v26 = vld [vmem:[#allocation14 + $0x10] sm:$0xff] }
 0x3f2   : > { %2023 = vmatpush3.msra.mxu0 %v1370_v37  ;;  %2271 = vmatpush3.msra.mxu1 %v1478_v62  ;;  %v1574_v27 = vld [vmem:[#allocation14 + $0x8] sm:$0xff]  ;;  %v1573_v28 = vld [vmem:[#allocation14] sm:$0xff] }
 0x3f3   : > { %2024 = vmatprep.subr.mxu0 %v1385_v39  ;;  %2272 = vmatprep.subr.mxu1 %v1477_v1  ;;  %v1904_v29 = vld [vmem:[%s3623_s4] ss:$0 sm:$0xff] }
 0x3f4   : > { %2025 = vmatpush3.msra.mxu0 %v1369_v40  ;;  %2273 = vmatpush3.msra.mxu1 %v1477_v1  ;;  %v1905_v37 = vld [vmem:[%s3624_s2] ss:$0 sm:$0xff] }
 0x3f5   : > { %2026 = vmatprep.subr.mxu0 %v1384_v42  ;;  %2274 = vmatprep.subr.mxu1 %v1476_v3 }
 0x3f6   : > { %2027 = vmatpush3.msra.mxu0 %v1368_v43  ;;  %2275 = vmatpush3.msra.mxu1 %v1476_v3 }
 0x3f7   : > { %2028 = vmatprep.subr.mxu0 %v1383_v45  ;;  %2276 = vmatprep.subr.mxu1 %v1475_v4 }
 0x3f8   : > { %2029 = vmatpush3.msra.mxu0 %v1367_v46  ;;  %2277 = vmatpush3.msra.mxu1 %v1475_v4 }
 0x3f9   : > { %2030 = vmatprep.subr.mxu0 %v1382_v49  ;;  %2278 = vmatprep.subr.mxu1 %v1474_v5 }
 0x3fa   : > { %2031 = vmatpush3.msra.mxu0 %v1366_v50  ;;  %2279 = vmatpush3.msra.mxu1 %v1474_v5 }
 0x3fb   : > { %2032 = vmatprep.subr.mxu0 %v1381_v51  ;;  %2280 = vmatprep.subr.mxu1 %v1473_v6 }
 0x3fc   : > { %2033 = vmatpush3.msra.mxu0 %v1365_v52  ;;  %2281 = vmatpush3.msra.mxu1 %v1473_v6 }
 0x3fd   : > { %2034 = vmatprep.subr.mxu0 %v1380_v54 }
 0x3fe   : > { %2035 = vmatpush3.msra.mxu0 %v1364_v55 }
 0x3ff   : > { %2036 = vmatprep.subr.mxu0 %v1379_v57 }
 0x400   : > { %2037 = vmatpush3.msra.mxu0 %v1363_v58 }
 0x401   : > { %2038 = vmatprep.subr.mxu0 %v1378_v60 }
 0x402   : > { %2039 = vmatpush3.msra.mxu0 %v1362_v61 }
 0x403   : > { %1463 = vmatmul.mubr.f32.vlgmr.msra.gmra.mxu0 %v1394_v63  ;;  %2285 = vmatprep.subr.mxu0 %v1588_v7 }
 0x404   : > { %1467 = vmatprep.mubr.f32.mxu0 %v1397_v0  ;;  %2286 = vmatpush3.msra.mxu0 %v1588_v7 }
 0x405   : > { %2287 = vmatprep.subr.mxu0 %v1587_v8 }
 0x406   : > { %2288 = vmatpush3.msra.mxu0 %v1587_v8 }
 0x407   : > { %1468 = vmatmul.mubr.f32.gmra.mxu0 %v1396_v2  ;;  %2289 = vmatprep.subr.mxu0 %v1586_v9 }
 0x408   : > { %2290 = vmatpush3.msra.mxu0 %v1586_v9 }
 0x409   : > { %2291 = vmatprep.subr.mxu0 %v1585_v10 }
 0x40a   : > { %2292 = vmatpush3.msra.mxu0 %v1585_v10 }
 0x40b   : > { %2293 = vmatprep.subr.mxu0 %v1584_v11 }
 0x40c   : > { %2294 = vmatpush3.msra.mxu0 %v1584_v11 }
 0x40d   : > { %2295 = vmatprep.subr.mxu0 %v1583_v12 }
 0x40e   : > { %2296 = vmatpush3.msra.mxu0 %v1583_v12 }
 0x40f   : > { %2297 = vmatprep.subr.mxu0 %v1582_v13 }
 0x410   : > { %2298 = vmatpush3.msra.mxu0 %v1582_v13 }
 0x411   : > { %2299 = vmatprep.subr.mxu0 %v1581_v14 }
 0x412   : > { %2300 = vmatpush3.msra.mxu0 %v1581_v14 }
 0x413   : > { %2301 = vmatprep.subr.mxu0 %v1580_v15 }
 0x414   : > { %2302 = vmatpush3.msra.mxu0 %v1580_v15 }
 0x415   : > { %2303 = vmatprep.subr.mxu0 %v1579_v16 }
 0x416   : > { %2304 = vmatpush3.msra.mxu0 %v1579_v16 }
 0x417   : > { %2305 = vmatprep.subr.mxu0 %v1578_v17 }
 0x418   : > { %2306 = vmatpush3.msra.mxu0 %v1578_v17 }
 0x419   : > { %2307 = vmatprep.subr.mxu0 %v1577_v18 }
 0x41a   : > { %2308 = vmatpush3.msra.mxu0 %v1577_v18 }
 0x41b   : > { %2309 = vmatprep.subr.mxu0 %v1576_v25 }
 0x41c   : > { %2310 = vmatpush3.msra.mxu0 %v1576_v25 }
 0x41d   : > { %2311 = vmatprep.subr.mxu0 %v1575_v26 }
 0x41e   : > { %2312 = vmatpush3.msra.mxu0 %v1575_v26 }
 0x41f   : > { %2313 = vmatprep.subr.mxu0 %v1574_v27 }
 0x420   : > { %2314 = vmatpush3.msra.mxu0 %v1574_v27 }
 0x421   : > { %2315 = vmatprep.subr.mxu0 %v1573_v28 }
 0x422   : > { %2316 = vmatpush3.msra.mxu0 %v1573_v28 }
 0x4c3   : > { %v2040_v19 = vpop.f32.mrf.mxu0 }
 0x4c5   : > { %v2041_v20 = vpop.f32.mrf.mxu0 }
 0x4c6   : > { %v2042_v21 = vadd.f32 %v2041_v20, %v2040_v19 }
 0x4c7   : > { %v2043_v22 = vpop.f32.mrf.mxu0 }
 0x4c8   : > { %2282 = vmatprep.mubr.f32.mxu1 %v2042_v21 }
 0x4c9   : > { %v2044_v23 = vpop.f32.mrf.mxu0 }
 0x4ca   : > { %v2045_v24 = vadd.f32 %v2044_v23, %v2043_v22 }
 0x4cc   : > { %2283 = vmatmul.mubr.f32.vlgmr.msra.gmra.mxu1 %v2045_v24 }
 0x58c   : > { %v2284_v30 = vpop.f32.mrf.mxu1 }
 0x58d   : > { %v1568_v31 = vadd.f32 %v2284_v30, %v1904_v29 }
 0x58e   : > { %v1562_v32 = vpop.f32.mrf.mxu1 }
 0x58f   : > { %v1563_v33 = vadd.f32 %v1904_v29, %v1562_v32  ;;  %v1572_v35 = vmax.f32 %v1568_v31, 0.0 }
 0x591   : > { %v1571_v34 = vmax.f32 %v1563_v33, 0.0 }
 0x593   : > { %2317 = vmatprep.mubr.f32.mxu0 %v1571_v34 }
 0x594   : > { %2318 = vmatmul.mubr.f32.vlgmr.msra.gmra.mxu0 %v1572_v35 }
 0x654   : > { %v2319_v36 = vpop.f32.mrf.mxu0 }
 0x655   : > { %v1668_v40 = vadd.f32 %v2319_v36, %v1905_v37 }
 0x656   : > { %v1662_v38 = vpop.f32.mrf.mxu0 }
 0x657   : > { %v1663_v39 = vadd.f32 %v1905_v37, %v1662_v38 }
 0x659   : > { %1671 = vmax.xlane.f32.xlu0 %v1663_v39 }
 0x65d   : > { %1673 = vmax.xlane.f32.xlu0 %v1668_v40 }
 0x6e2   : > { %v1672_v41 = vpop.xlane.xlu0 %1671 }
 0x6e3   : > { %v1675_v42 = vsub.f32 %v1663_v39, %v1672_v41 }
 0x6e5   : > { %v1677_v43 = vmul.f32 1.442695, %v1675_v42 }
 0x6e6   : > { %v1674_v44 = vpop.xlane.xlu0 %1673 }
 0x6e7   : > { %2591 = vpow2.f32 %v1677_v43  ;;  %v1676_v45 = vsub.f32 %v1668_v40, %v1674_v44 }
 0x6e9   : > { %v1679_v46 = vmul.f32 1.442695, %v1676_v45 }
 0x6eb   : > { %2593 = vpow2.f32 %v1679_v46 }
 0x6f4   : > { %v2592_v47 = vpop.eup %2591 }
 0x6f5   : > { %1681 = vadd.xlane.f32.xlu1 %v2592_v47 }
 0x6f8   : > { %v2594_v49 = vpop.eup %2593 }
 0x6f9   : > { %1683 = vadd.xlane.f32.xlu1 %v2594_v49 }
 0x77e   : > { %v1682_v50 = vpop.xlane.xlu1 %1681 }
 0x77f   : > { %2595 = vlog2.f32 %v1682_v50 }
 0x782   : > { %v1684_v48 = vpop.xlane.xlu1 %1683 }
 0x783   : > { %2597 = vlog2.f32 %v1684_v48 }
 0x78c   : > { %v2596_v51 = vpop.eup %2595 }
 0x78d   : > { %v1686_v52 = vmul.f32 0.6931472, %v2596_v51 }
 0x78f   : > { %v1689_v53 = vadd.f32 %v1686_v52, %v1672_v41 }
 0x790   : > { %v2598_v54 = vpop.eup %2597 }
 0x791   : > { %v1691_v55 = vsub.f32 %v1663_v39, %v1689_v53  ;;  %v1688_v56 = vmul.f32 0.6931472, %v2598_v54 }
 0x793   : > { %1693 = vst [vmem:[#allocation15] sm:$0xff] %v1691_v55  ;;  %v1690_v57 = vadd.f32 %v1688_v56, %v1674_v44 }
 0x795   : > { %v1692_v58 = vsub.f32 %v1668_v40, %v1690_v57 }
 0x797   : > { %1694 = vst [vmem:[#allocation15 + $0x8] sm:$0xff] %v1692_v58 }
 0x798 PF: > { %p2462_p11 = scmp.eq.s32.totalorder %s3088_s13, 15  ;;  %s2959_s14 = smov [#allocation15]  }
 0x799   : > { %s1701_s25 = sshll.u32 %s2959_s14, 4  ;;  %s1702_s25 = int_to_ptr.vmem [resolvable:$true] %s1701_s25 }
 0x79a   : > { %s2785_s9 = scalar_lea.vmem %s1702_s25, 256  ;;  %p2792_p6 = scmp.lt.s32.totalorder %s1702_s25, %s1702_s25 }
 0x79b   : > { %p2786_p12 = scmp.ne.s32.totalorder %s1702_s25, %s2785_s9  ;;  %p2793_p0 = scmp.lt.s32.totalorder %s2785_s9, %s2785_s9 }
 0x79d   : > { %p2787_p9 = pnand %p2786_p12, %p2462_p11  ;;  %p2794_p3 = por %p2793_p0, %p2792_p6 }
 0x79f   : > { %p2788_p4 = pneg %p2787_p9 }
 0x7a1   : > { %p2795_p5 = pnand %p2794_p3, %p2788_p4 }
 0x7a3   : > { %2798 = shalt.err (!%p2795_p5)
}
 0x7a4   : > { %s2960_s21 = smov 128   ;;  %s2961_s15 = smov 8  }
 0x7a5   : > { %s3625_s11 = sld [smem:[#allocation39_spill]] }
 0x7ab   : > { %2425 = dma.vmem_to_hbm [thread:$0]  (%p2462_p11), %s1702_s25, 256, %s3625_s11, [#allocation6], %s2960_s21, %s2960_s21, %s2961_s15  }
 0x7ac   : > { %2890 = dma.done.wait (%p2462_p11), [#allocation6], 256  }
 0x7ad   : > { %2892 = vsyncadd (%p2462_p11), [#allocation6], 4294967040 }
 0x7ae PF: > { %s27_s29 = sadd.s32 1, %s2943_s29   ;;  %s3627_s7 = sld [smem:[#allocation24_spill]] }
 0x7af   : > { %p3497_p13 = scmp.ge.s32.totalorder %s27_s29, 18   ;;  %s3628_s4 = sld [smem:[#allocation29_spill]] }
 0x7b0   : > { %s3629_s17 = smov %s2899_s18  ;;  %s3630_s18 = smov %s2903_s19 }
 0x7b1   : > { %s3631_s19 = smov %s3247_s20  ;;  %s3633_s21 = smov %s2915_s22 }
 0x7b2   : > { %s3634_s22 = smov %s3198_s0  ;;  %s3635_s23 = smov %s2931_s26 }
 0x7b3   : > { %s3636_s24 = smov %s2935_s27  ;;  %s3637_s25 = smov %s2939_s28 }
 0x7b4   : > { %s3632_s20 = smov %s3627_s7  ;;  %s3639_s27 = smov %s3184_s10 }
 0x7b5   : > { %s3638_s26 = smov %s3628_s4  ;;  %s3640_s28 = smov %s3648_s6 }
 0x7b6   :  { %26 = sbr.rel (!%p3497_p13) target bundleno = 22 (0x16), region = 155 }
 0x7bb   :  { %1717 = vsyncpa [#allocation5], 1 }
 0x7bc   :  { %1719 = vsyncpa [#allocation5 + $0x1], 1 }
 0x7bd   :  { %1720 = vsyncpa [#allocation8], 1 }
 0x7be   :  { %1722 = vsyncpa [#allocation8 + $0x1], 1 }
 0x7bf   :  { %1723 = vsyncpa [#allocation11], 1 }
 0x7c0   :  { %1724 = vsyncpa [#allocation6], 1 }
 0x7c1   :  { %1726 = vsyncpa [#allocation6 + $0x1], 1 }

</bundles_post_ra>
